<compile_context>
chip_gen: v7x
topology: tpu7x:2x2x1
jax: 0.10.0
libtpu: 0.0.40
codegen_flags: <defaults>
</compile_context>

<pallas_src>
from functools import partial

import jax
import jax.numpy as jnp
import numpy as np
from jax.experimental import pallas as pl
from jax.experimental.pallas import tpu as pltpu


# --------------------- fused GroupNorm + attention kernel ---------------------
def mvattn_kernel(x_ref, ohvn_ref, mgc_ref, mcg_ref, gamma_ref, beta_ref,
                  wqkv_t_ref, wp_t_ref, bp_ref, o_ref, qkv_scr, out_scr, *,
                  num_heads, hw, skip_scale, residual, eps):
    f32 = jnp.float32
    bf16 = jnp.bfloat16

    xT = x_ref[0].astype(f32)                      # (C, N), channels on sublanes
    C, N = xT.shape
    d = C // num_heads

    ohvn = ohvn_ref[...]                           # (V, N) view one-hot, f32
    mgc = mgc_ref[...]                             # (G, C) group one-hot
    mcg = mcg_ref[...]                             # (C, G) its transpose
    G = mgc.shape[0]
    inv_cnt = 1.0 / float((C // G) * hw)           # 1 / elements per (group, view)

    dn_bt = (((1,), (1,)), ((), ()))               # contract last dims (A @ B^T)

    # -------- GroupNorm per view: single-pass uncentered stats, folded affine --
    stats = jnp.concatenate([xT, xT * xT], axis=0)                             # (2C, N)
    s12 = jax.lax.dot_general(stats, ohvn, dn_bt, preferred_element_type=f32)  # (2C, V)
    mean_gv = jnp.dot(mgc, s12[:C], preferred_element_type=f32) * inv_cnt      # (G, V)
    ex2_gv = jnp.dot(mgc, s12[C:], preferred_element_type=f32) * inv_cnt       # (G, V)
    var_gv = ex2_gv - mean_gv * mean_gv
    inv_gv = jax.lax.rsqrt(var_gv + eps)
    inv_cv = jnp.dot(mcg, inv_gv, preferred_element_type=f32)                  # (C, V)
    mean_cv = jnp.dot(mcg, mean_gv, preferred_element_type=f32)                # (C, V)
    scale_cv = inv_cv * gamma_ref[...]                                         # (C, V)
    shift_cv = beta_ref[...] - mean_cv * scale_cv                              # (C, V)
    scale_cn = jnp.dot(scale_cv, ohvn, preferred_element_type=f32)             # (C, N)
    shift_cn = jnp.dot(shift_cv, ohvn, preferred_element_type=f32)             # (C, N)
    xn = xT * scale_cn + shift_cn                                              # (C, N)

    # -------- qkv projection (Q scale pre-folded into wqkv_t in the wrapper) ---
    qkv_scr[...] = jnp.dot(wqkv_t_ref[...], xn.astype(bf16),
                           preferred_element_type=f32)                         # (3C, N)

    # -------- per-head attention, serialized (one (N,N) temp live at a time) ---
    def head_body(h, carry):
        qo = pl.multiple_of(h * d, d)
        ko = pl.multiple_of(h * d + C, d)
        vo = pl.multiple_of(h * d + 2 * C, d)

        q_h = qkv_scr[pl.ds(qo, d), :]             # (d, N) f32, sublane slice
        k_h = qkv_scr[pl.ds(ko, d), :]             # (d, N) f32
        v_h = qkv_scr[pl.ds(vo, d), :]             # (d, N) f32

        # scores: small per-head transpose instead of lane-slicing a (N,C) matrix
        s = jnp.dot(jnp.transpose(q_h), k_h, preferred_element_type=f32)  # (N, N)
        s = s - jnp.max(s, axis=-1, keepdims=True)
        p = jnp.exp(s)
        p = p * pl.reciprocal(jnp.sum(p, axis=-1, keepdims=True), approx=True)

        # out_h^T = v_h @ p^T  (contract lane dims of both -> MXU A @ B^T)
        o_h = jax.lax.dot_general(v_h.astype(bf16), p.astype(bf16), dn_bt,
                                  preferred_element_type=f32)             # (d, N)
        out_scr[pl.ds(qo, d), :] = o_h
        return carry

    jax.lax.fori_loop(0, num_heads, head_body, 0)

    # -------- output projection + bias + residual -------------------------------
    yT = jnp.dot(wp_t_ref[...], out_scr[...].astype(bf16),
                 preferred_element_type=f32)                                   # (C, N)
    yT = yT + bp_ref[...]                          # (C, 1) broadcast over lanes
    if residual:
        yT = yT + xT
    if skip_scale != 1.0:
        yT = yT * skip_scale
    o_ref[0] = yT.astype(o_ref.dtype)


# ----------------------------------- wrapper ----------------------------------
def mv_attention(x, params, *, num_views=4, num_heads=8, groups=32, eps=1e-5,
                 skip_scale=1.0, residual=True):
    BTV, C, H, W = x.shape
    BT = BTV // num_views
    HW = H * W
    N = num_views * HW
    cg = C // groups
    d = C // num_heads

    gamma = params["gamma"].reshape(-1, 1).astype(jnp.float32)     # (C, 1)
    beta = params["beta"].reshape(-1, 1).astype(jnp.float32)       # (C, 1)
    # fold the softmax scale into the Q rows of wqkv^T before the bf16 cast
    wqkv_t = params["wqkv"].T.astype(jnp.float32)                  # (3C, C)
    wqkv_t = wqkv_t.at[:C].multiply(float(d) ** -0.5).astype(jnp.bfloat16)
    wp_t = params["wp"].T.astype(jnp.bfloat16)                     # (C, C)
    bp = params["bp"].reshape(-1, 1).astype(jnp.float32)           # (C, 1)

    # NCHW -> per-(B*T) channel-major token matrix (C, N), tokens ordered (v, h, w)
    x_cn = (x.reshape(BT, num_views, C, HW)
             .transpose(0, 2, 1, 3)
             .reshape(BT, C, N))

    onehot_vn = (jnp.arange(N)[None, :] // HW
                 == jnp.arange(num_views)[:, None]).astype(jnp.float32)   # (V, N)
    m_gc = (jnp.arange(C)[None, :] // cg
            == jnp.arange(groups)[:, None]).astype(jnp.float32)           # (G, C)
    m_cg = (jnp.arange(C)[:, None] // cg
            == jnp.arange(groups)[None, :]).astype(jnp.float32)           # (C, G)

    kernel = partial(mvattn_kernel, num_heads=num_heads, hw=HW,
                     skip_scale=float(skip_scale), residual=bool(residual),
                     eps=float(eps))

    # VMEM budget estimate (v7x has 64 MiB physical; default scoped is enough here
    # but make the working set explicit).
    f32b = 4
    work_set = f32b * (2 * C * N          # x block (double-buffered)
                       + 2 * C * N        # out block (double-buffered)
                       + 3 * C * N        # qkv scratch
                       + C * N            # head-output scratch
                       + 2 * N * N        # one head's scores + softmax temporaries
                       + 6 * C * N)       # xn / projection temporaries headroom
    work_set += 2 * 2 * (3 * C * C + C * C)   # bf16 weights, double-buffered
    vmem_limit = int(min(64 * 1024 * 1024, max(32 * 1024 * 1024, 2 * work_set)))

    y_cn = pl.pallas_call(
        kernel,
        out_shape=jax.ShapeDtypeStruct((BT, C, N), jnp.float32),
        grid=(BT,),
        in_specs=[
            pl.BlockSpec((1, C, N), lambda i: (i, 0, 0)),      # x^T block
            pl.BlockSpec((num_views, N), lambda i: (0, 0)),    # view one-hot
            pl.BlockSpec((groups, C), lambda i: (0, 0)),       # group one-hot
            pl.BlockSpec((C, groups), lambda i: (0, 0)),       # group one-hot^T
            pl.BlockSpec((C, 1), lambda i: (0, 0)),            # gamma
            pl.BlockSpec((C, 1), lambda i: (0, 0)),            # beta
            pl.BlockSpec((3 * C, C), lambda i: (0, 0)),        # wqkv^T (bf16, Q pre-scaled)
            pl.BlockSpec((C, C), lambda i: (0, 0)),            # wp^T (bf16)
            pl.BlockSpec((C, 1), lambda i: (0, 0)),            # proj bias
        ],
        out_specs=pl.BlockSpec((1, C, N), lambda i: (i, 0, 0)),
        scratch_shapes=[
            pltpu.VMEM((3 * C, N), jnp.float32),               # qkv^T scratch
            pltpu.VMEM((C, N), jnp.float32),                   # per-head output accumulator
        ],
        compiler_params=pltpu.CompilerParams(
            dimension_semantics=("parallel",),                 # BT>=2 -> both v7x TCs busy
            vmem_limit_bytes=vmem_limit),
    )(x_cn, onehot_vn, m_gc, m_cg, gamma, beta, wqkv_t, wp_t, bp)

    # (BT, C, N) -> (BTV, C, H, W)
    y = (y_cn.reshape(BT, C, num_views, HW)
             .transpose(0, 2, 1, 3)
             .reshape(BTV, C, H, W))
    return y


# ----------------------------- pure-JAX reference ------------------------------
def mv_attention_ref(x, params, *, num_views=4, num_heads=8, groups=32, eps=1e-5,
                     skip_scale=1.0, residual=True):
    gamma, beta, wqkv, wp, bp = (params["gamma"], params["beta"],
                                 params["wqkv"], params["wp"], params["bp"])
    BTV, C, H, W = x.shape
    BT = BTV // num_views
    cg = C // groups

    xg = x.reshape(BTV, groups, cg, H, W)
    mean = xg.mean(axis=(2, 3, 4), keepdims=True)
    var = ((xg - mean) ** 2).mean(axis=(2, 3, 4), keepdims=True)
    xn = ((xg - mean) / jnp.sqrt(var + eps)).reshape(BTV, C, H, W)
    xn = xn * gamma.reshape(1, C, 1, 1) + beta.reshape(1, C, 1, 1)

    t = xn.reshape(BT, num_views, C, H, W).transpose(0, 1, 3, 4, 2).reshape(BT, -1, C)
    N = t.shape[1]
    d = C // num_heads
    qkv = t @ wqkv                                         # (BT, N, 3C)
    q, k, v = qkv[..., :C], qkv[..., C:2 * C], qkv[..., 2 * C:]
    q = q.reshape(BT, N, num_heads, d).transpose(0, 2, 1, 3) * (d ** -0.5)
    k = k.reshape(BT, N, num_heads, d).transpose(0, 2, 1, 3)
    v = v.reshape(BT, N, num_heads, d).transpose(0, 2, 1, 3)
    s = q @ k.transpose(0, 1, 3, 2)
    p = jax.nn.softmax(s, axis=-1)
    o = (p @ v).transpose(0, 2, 1, 3).reshape(BT, N, C)
    o = o @ wp + bp.reshape(1, 1, C)
    o = o.reshape(BT, num_views, H, W, C).transpose(0, 1, 4, 2, 3).reshape(BTV, C, H, W)
    if residual:
        o = (o + x) * skip_scale
    return o


if __name__ == "__main__":
    # small shapes consistent with the module:
    # dim=64 (divisible by groups=32 and num_heads=8), H=W=8, num_views=4, BT=2
    DIM, H, W = 64, 8, 8
    NUM_VIEWS, NUM_HEADS, GROUPS = 4, 8, 32
    BT = 2
    BTV = BT * NUM_VIEWS

    key = jax.random.PRNGKey(0)
    kx, kg, kb, kqkv, kp, kbp = jax.random.split(key, 6)

    x = jax.random.normal(kx, (BTV, DIM, H, W), dtype=jnp.float32)

    params = {
        # GroupNorm affine params (C,)
        "gamma": 1.0 + 0.1 * jax.random.normal(kg, (DIM,), jnp.float32),
        "beta": 0.1 * jax.random.normal(kb, (DIM,), jnp.float32),
        # Linear weights stored (in, out); qkv_bias=False (module default), proj_bias=True
        "wqkv": 0.05 * jax.random.normal(kqkv, (DIM, 3 * DIM), jnp.float32),
        "wp": 0.05 * jax.random.normal(kp, (DIM, DIM), jnp.float32),
        "bp": 0.05 * jax.random.normal(kbp, (DIM,), jnp.float32),
    }

    out = mv_attention(x, params, num_views=NUM_VIEWS, num_heads=NUM_HEADS,
                       groups=GROUPS, eps=1e-5, skip_scale=1.0, residual=True)
    out = jax.block_until_ready(out)

    ref = mv_attention_ref(x, params, num_views=NUM_VIEWS, num_heads=NUM_HEADS,
                           groups=GROUPS, eps=1e-5, skip_scale=1.0, residual=True)
    # bf16 MXU operands (f32 accumulation) -> slightly looser tolerance than pure f32
    np.testing.assert_allclose(np.asarray(out), np.asarray(ref), rtol=1e-2, atol=1e-2)

    print("KERNEL_OK")
</pallas_src>

<mosaic_0001>
module attributes {stable_mosaic.version = 11 : i64} {
  func.func @mvattn_kernel(%arg0: i32, %arg1: memref<1x64x256xf32, #tpu.memory_space<vmem>>, %arg2: memref<4x256xf32, #tpu.memory_space<vmem>>, %arg3: memref<32x64xf32, #tpu.memory_space<vmem>>, %arg4: memref<64x32xf32, #tpu.memory_space<vmem>>, %arg5: memref<64x1xf32, #tpu.memory_space<vmem>>, %arg6: memref<64x1xf32, #tpu.memory_space<vmem>>, %arg7: memref<192x64xbf16, #tpu.memory_space<vmem>>, %arg8: memref<64x64xbf16, #tpu.memory_space<vmem>>, %arg9: memref<64x1xf32, #tpu.memory_space<vmem>>, %arg10: memref<1x64x256xf32, #tpu.memory_space<vmem>>, %arg11: memref<192x256xf32, #tpu.memory_space<vmem>>, %arg12: memref<64x256xf32, #tpu.memory_space<vmem>>) attributes {dimension_semantics = [#tpu.dimension_semantics<parallel>], iteration_bounds = array<i64: 2>, scalar_prefetch = 0 : i64, scratch_operands = 2 : i64, tpu.core_type = #tpu.core_type<tc>, window_params = [{transform_indices = @transform_0, window_bounds = array<i64: 1, 64, 256>}, {pipeline_mode = #tpu.pipeline_mode<synchronous>, transform_indices = @transform_1, window_bounds = array<i64: 4, 256>}, {pipeline_mode = #tpu.pipeline_mode<synchronous>, transform_indices = @transform_2, window_bounds = array<i64: 32, 64>}, {pipeline_mode = #tpu.pipeline_mode<synchronous>, transform_indices = @transform_3, window_bounds = array<i64: 64, 32>}, {pipeline_mode = #tpu.pipeline_mode<synchronous>, transform_indices = @transform_4, window_bounds = array<i64: 64, 1>}, {pipeline_mode = #tpu.pipeline_mode<synchronous>, transform_indices = @transform_5, window_bounds = array<i64: 64, 1>}, {pipeline_mode = #tpu.pipeline_mode<synchronous>, transform_indices = @transform_6, window_bounds = array<i64: 192, 64>}, {pipeline_mode = #tpu.pipeline_mode<synchronous>, transform_indices = @transform_7, window_bounds = array<i64: 64, 64>}, {pipeline_mode = #tpu.pipeline_mode<synchronous>, transform_indices = @transform_8, window_bounds = array<i64: 64, 1>}, {transform_indices = @transform_9, window_bounds = array<i64: 1, 64, 256>}]} {
    %c0 = arith.constant 0 : index
    %c0_0 = arith.constant 0 : index
    %c0_1 = arith.constant 0 : index
    %0 = vector.load %arg1[%c0, %c0_0, %c0_1] : memref<1x64x256xf32, #tpu.memory_space<vmem>>, vector<1x64x256xf32>
    %1 = vector.shape_cast %0 : vector<1x64x256xf32> to vector<64x256xf32>
    %c0_2 = arith.constant 0 : index
    %c0_3 = arith.constant 0 : index
    %2 = vector.load %arg2[%c0_2, %c0_3] : memref<4x256xf32, #tpu.memory_space<vmem>>, vector<4x256xf32>
    %c0_4 = arith.constant 0 : index
    %c0_5 = arith.constant 0 : index
    %3 = vector.load %arg3[%c0_4, %c0_5] : memref<32x64xf32, #tpu.memory_space<vmem>>, vector<32x64xf32>
    %c0_6 = arith.constant 0 : index
    %c0_7 = arith.constant 0 : index
    %4 = vector.load %arg4[%c0_6, %c0_7] : memref<64x32xf32, #tpu.memory_space<vmem>>, vector<64x32xf32>
    %5 = arith.mulf %1, %1 : vector<64x256xf32>
    %6 = tpu.concatenate %1, %5 in 0 : vector<64x256xf32>, vector<64x256xf32> -> vector<128x256xf32>
    %cst = arith.constant dense<0.000000e+00> : vector<128x4xf32>
    %7 = tpu.matmul %6, %2, %cst {dimension_numbers = #tpu.dot_dimension_numbers<[1], [1], [0], [0], [0, 0, 1, 0], [], []>} : vector<128x256xf32>, vector<4x256xf32>, vector<128x4xf32> -> vector<128x4xf32>
    %8 = vector.extract_strided_slice %7 {offsets = [0, 0], sizes = [64, 4], strides = [1, 1]} : vector<128x4xf32> to vector<64x4xf32>
    %cst_8 = arith.constant dense<0.000000e+00> : vector<32x4xf32>
    %9 = tpu.matmul %3, %8, %cst_8 {dimension_numbers = #tpu.dot_dimension_numbers<[1], [0], [0], [1], [0, 0, 1, 1], [], []>} : vector<32x64xf32>, vector<64x4xf32>, vector<32x4xf32> -> vector<32x4xf32>
    %cst_9 = arith.constant 7.812500e-03 : f32
    %10 = vector.broadcast %cst_9 : f32 to vector<32x4xf32>
    %11 = arith.mulf %9, %10 : vector<32x4xf32>
    %12 = vector.extract_strided_slice %7 {offsets = [64, 0], sizes = [64, 4], strides = [1, 1]} : vector<128x4xf32> to vector<64x4xf32>
    %cst_10 = arith.constant dense<0.000000e+00> : vector<32x4xf32>
    %13 = tpu.matmul %3, %12, %cst_10 {dimension_numbers = #tpu.dot_dimension_numbers<[1], [0], [0], [1], [0, 0, 1, 1], [], []>} : vector<32x64xf32>, vector<64x4xf32>, vector<32x4xf32> -> vector<32x4xf32>
    %cst_11 = arith.constant 7.812500e-03 : f32
    %14 = vector.broadcast %cst_11 : f32 to vector<32x4xf32>
    %15 = arith.mulf %13, %14 : vector<32x4xf32>
    %16 = arith.mulf %11, %11 : vector<32x4xf32>
    %17 = arith.subf %15, %16 : vector<32x4xf32>
    %cst_12 = arith.constant 9.99999974E-6 : f32
    %18 = vector.broadcast %cst_12 : f32 to vector<32x4xf32>
    %19 = arith.addf %17, %18 : vector<32x4xf32>
    %20 = math.rsqrt %19 : vector<32x4xf32>
    %cst_13 = arith.constant dense<0.000000e+00> : vector<64x4xf32>
    %21 = tpu.matmul %4, %20, %cst_13 {dimension_numbers = #tpu.dot_dimension_numbers<[1], [0], [0], [1], [0, 0, 1, 1], [], []>} : vector<64x32xf32>, vector<32x4xf32>, vector<64x4xf32> -> vector<64x4xf32>
    %cst_14 = arith.constant dense<0.000000e+00> : vector<64x4xf32>
    %22 = tpu.matmul %4, %11, %cst_14 {dimension_numbers = #tpu.dot_dimension_numbers<[1], [0], [0], [1], [0, 0, 1, 1], [], []>} : vector<64x32xf32>, vector<32x4xf32>, vector<64x4xf32> -> vector<64x4xf32>
    %c0_15 = arith.constant 0 : index
    %c0_16 = arith.constant 0 : index
    %23 = vector.load %arg5[%c0_15, %c0_16] : memref<64x1xf32, #tpu.memory_space<vmem>>, vector<64x1xf32>
    %24 = vector.broadcast %23 : vector<64x1xf32> to vector<64x4xf32>
    %25 = arith.mulf %21, %24 : vector<64x4xf32>
    %c0_17 = arith.constant 0 : index
    %c0_18 = arith.constant 0 : index
    %26 = vector.load %arg6[%c0_17, %c0_18] : memref<64x1xf32, #tpu.memory_space<vmem>>, vector<64x1xf32>
    %27 = arith.mulf %22, %25 : vector<64x4xf32>
    %28 = vector.broadcast %26 : vector<64x1xf32> to vector<64x4xf32>
    %29 = arith.subf %28, %27 : vector<64x4xf32>
    %cst_19 = arith.constant dense<0.000000e+00> : vector<64x256xf32>
    %30 = tpu.matmul %25, %2, %cst_19 {dimension_numbers = #tpu.dot_dimension_numbers<[1], [0], [0], [1], [0, 0, 1, 1], [], []>} : vector<64x4xf32>, vector<4x256xf32>, vector<64x256xf32> -> vector<64x256xf32>
    %cst_20 = arith.constant dense<0.000000e+00> : vector<64x256xf32>
    %31 = tpu.matmul %29, %2, %cst_20 {dimension_numbers = #tpu.dot_dimension_numbers<[1], [0], [0], [1], [0, 0, 1, 1], [], []>} : vector<64x4xf32>, vector<4x256xf32>, vector<64x256xf32> -> vector<64x256xf32>
    %32 = arith.mulf %1, %30 : vector<64x256xf32>
    %33 = arith.addf %32, %31 : vector<64x256xf32>
    %c0_21 = arith.constant 0 : index
    %c0_22 = arith.constant 0 : index
    %34 = vector.load %arg7[%c0_21, %c0_22] : memref<192x64xbf16, #tpu.memory_space<vmem>>, vector<192x64xbf16>
    %35 = arith.truncf %33 : vector<64x256xf32> to vector<64x256xbf16>
    %cst_23 = arith.constant dense<0.000000e+00> : vector<192x256xf32>
    %36 = tpu.matmul %34, %35, %cst_23 {dimension_numbers = #tpu.dot_dimension_numbers<[1], [0], [0], [1], [0, 0, 1, 1], [], []>} : vector<192x64xbf16>, vector<64x256xbf16>, vector<192x256xf32> -> vector<192x256xf32>
    %c0_24 = arith.constant 0 : index
    %c0_25 = arith.constant 0 : index
    %37 = vector.load %arg11[%c0_24, %c0_25] : memref<192x256xf32, #tpu.memory_space<vmem>>, vector<192x256xf32>
    tpu.vector_store %arg11[%c0_24, %c0_25], %36 {strides = array<i32>} : memref<192x256xf32, #tpu.memory_space<vmem>>, vector<192x256xf32>,
    %c0_i32 = arith.constant 0 : i32
    %c8_i32 = arith.constant 8 : i32
    %38 = arith.addi %c0_i32, %c8_i32 : i32
    %c1_i32 = arith.constant 1 : i32
    scf.for %arg13 = %c0_i32 to %38 step %c1_i32  : i32 {
      %c8_i32_37 = arith.constant 8 : i32
      %50 = arith.muli %arg13, %c8_i32_37 : i32
      %51 = tpu.assume_multiple %50, 8 : i32
      %c8_i32_38 = arith.constant 8 : i32
      %52 = arith.muli %arg13, %c8_i32_38 : i32
      %c64_i32 = arith.constant 64 : i32
      %53 = arith.addi %52, %c64_i32 : i32
      %54 = tpu.assume_multiple %53, 8 : i32
      %c8_i32_39 = arith.constant 8 : i32
      %55 = arith.muli %arg13, %c8_i32_39 : i32
      %c128_i32 = arith.constant 128 : i32
      %56 = arith.addi %55, %c128_i32 : i32
      %57 = tpu.assume_multiple %56, 8 : i32
      %58 = arith.index_cast %51 : i32 to index
      %c0_40 = arith.constant 0 : index
      %59 = vector.load %arg11[%58, %c0_40] : memref<192x256xf32, #tpu.memory_space<vmem>>, vector<8x256xf32>
      %60 = arith.index_cast %54 : i32 to index
      %c0_41 = arith.constant 0 : index
      %61 = vector.load %arg11[%60, %c0_41] : memref<192x256xf32, #tpu.memory_space<vmem>>, vector<8x256xf32>
      %62 = arith.index_cast %57 : i32 to index
      %c0_42 = arith.constant 0 : index
      %63 = vector.load %arg11[%62, %c0_42] : memref<192x256xf32, #tpu.memory_space<vmem>>, vector<8x256xf32>
      %64 = tpu.transpose %59, [1, 0] : vector<8x256xf32> -> vector<256x8xf32>
      %cst_43 = arith.constant dense<0.000000e+00> : vector<256x256xf32>
      %65 = tpu.matmul %64, %61, %cst_43 {dimension_numbers = #tpu.dot_dimension_numbers<[1], [0], [0], [1], [0, 0, 1, 1], [], []>} : vector<256x8xf32>, vector<8x256xf32>, vector<256x256xf32> -> vector<256x256xf32>
      %cst_44 = arith.constant dense<0xFF800000> : vector<256xf32>
      %66 = vector.multi_reduction <maximumf>, %65, %cst_44 [1] : vector<256x256xf32> to vector<256xf32>
      %67 = vector.shape_cast %66 : vector<256xf32> to vector<256x1xf32>
      %68 = vector.broadcast %67 : vector<256x1xf32> to vector<256x256xf32>
      %69 = arith.subf %65, %68 : vector<256x256xf32>
      %70 = math.exp %69 : vector<256x256xf32>
      %cst_45 = arith.constant dense<0.000000e+00> : vector<256xf32>
      %71 = vector.multi_reduction <add>, %70, %cst_45 [1] : vector<256x256xf32> to vector<256xf32>
      %72 = vector.shape_cast %71 : vector<256xf32> to vector<256x1xf32>
      %73 = tpu.reciprocal %72 {approx = true} : vector<256x1xf32> -> vector<256x1xf32>
      %74 = vector.broadcast %73 : vector<256x1xf32> to vector<256x256xf32>
      %75 = arith.mulf %70, %74 : vector<256x256xf32>
      %76 = arith.truncf %63 : vector<8x256xf32> to vector<8x256xbf16>
      %77 = arith.truncf %75 : vector<256x256xf32> to vector<256x256xbf16>
      %cst_46 = arith.constant dense<0.000000e+00> : vector<8x256xf32>
      %78 = tpu.matmul %76, %77, %cst_46 {dimension_numbers = #tpu.dot_dimension_numbers<[1], [1], [0], [0], [0, 0, 1, 0], [], []>} : vector<8x256xbf16>, vector<256x256xbf16>, vector<8x256xf32> -> vector<8x256xf32>
      %79 = arith.index_cast %51 : i32 to index
      %c0_47 = arith.constant 0 : index
      %80 = vector.load %arg12[%79, %c0_47] : memref<64x256xf32, #tpu.memory_space<vmem>>, vector<8x256xf32>
      tpu.vector_store %arg12[%79, %c0_47], %78 {strides = array<i32>} : memref<64x256xf32, #tpu.memory_space<vmem>>, vector<8x256xf32>,
    }
    %c8_i32_26 = arith.constant 8 : i32
    %c0_27 = arith.constant 0 : index
    %c0_28 = arith.constant 0 : index
    %39 = vector.load %arg8[%c0_27, %c0_28] : memref<64x64xbf16, #tpu.memory_space<vmem>>, vector<64x64xbf16>
    %c0_29 = arith.constant 0 : index
    %c0_30 = arith.constant 0 : index
    %40 = vector.load %arg12[%c0_29, %c0_30] : memref<64x256xf32, #tpu.memory_space<vmem>>, vector<64x256xf32>
    %41 = arith.truncf %40 : vector<64x256xf32> to vector<64x256xbf16>
    %cst_31 = arith.constant dense<0.000000e+00> : vector<64x256xf32>
    %42 = tpu.matmul %39, %41, %cst_31 {dimension_numbers = #tpu.dot_dimension_numbers<[1], [0], [0], [1], [0, 0, 1, 1], [], []>} : vector<64x64xbf16>, vector<64x256xbf16>, vector<64x256xf32> -> vector<64x256xf32>
    %c0_32 = arith.constant 0 : index
    %c0_33 = arith.constant 0 : index
    %43 = vector.load %arg9[%c0_32, %c0_33] : memref<64x1xf32, #tpu.memory_space<vmem>>, vector<64x1xf32>
    %44 = vector.broadcast %43 : vector<64x1xf32> to vector<64x256xf32>
    %45 = arith.addf %42, %44 : vector<64x256xf32>
    %46 = arith.addf %45, %1 : vector<64x256xf32>
    %c0_34 = arith.constant 0 : index
    %c0_35 = arith.constant 0 : index
    %c0_36 = arith.constant 0 : index
    %47 = vector.load %arg10[%c0_34, %c0_35, %c0_36] : memref<1x64x256xf32, #tpu.memory_space<vmem>>, vector<1x64x256xf32>
    %48 = vector.shape_cast %47 : vector<1x64x256xf32> to vector<64x256xf32>
    %49 = vector.shape_cast %46 : vector<64x256xf32> to vector<1x64x256xf32>
    tpu.vector_store %arg10[%c0_34, %c0_35, %c0_36], %49 {strides = array<i32>} : memref<1x64x256xf32, #tpu.memory_space<vmem>>, vector<1x64x256xf32>,
    return
  }
  func.func @transform_0(%arg0: i32) -> (i32, i32, i32) {
    %c0_i32 = arith.constant 0 : i32
    %c0_i32_0 = arith.constant 0 : i32
    %c0_i32_1 = arith.constant 0 : i32
    return %arg0, %c0_i32, %c0_i32_0 : i32, i32, i32
  }
  func.func @transform_1(%arg0: i32) -> (i32, i32) {
    %c0_i32 = arith.constant 0 : i32
    %c0_i32_0 = arith.constant 0 : i32
    %c0_i32_1 = arith.constant 0 : i32
    return %c0_i32, %c0_i32_0 : i32, i32
  }
  func.func @transform_2(%arg0: i32) -> (i32, i32) {
    %c0_i32 = arith.constant 0 : i32
    %c0_i32_0 = arith.constant 0 : i32
    %c0_i32_1 = arith.constant 0 : i32
    return %c0_i32, %c0_i32_0 : i32, i32
  }
  func.func @transform_3(%arg0: i32) -> (i32, i32) {
    %c0_i32 = arith.constant 0 : i32
    %c0_i32_0 = arith.constant 0 : i32
    %c0_i32_1 = arith.constant 0 : i32
    return %c0_i32, %c0_i32_0 : i32, i32
  }
  func.func @transform_4(%arg0: i32) -> (i32, i32) {
    %c0_i32 = arith.constant 0 : i32
    %c0_i32_0 = arith.constant 0 : i32
    %c0_i32_1 = arith.constant 0 : i32
    return %c0_i32, %c0_i32_0 : i32, i32
  }
  func.func @transform_5(%arg0: i32) -> (i32, i32) {
    %c0_i32 = arith.constant 0 : i32
    %c0_i32_0 = arith.constant 0 : i32
    %c0_i32_1 = arith.constant 0 : i32
    return %c0_i32, %c0_i32_0 : i32, i32
  }
  func.func @transform_6(%arg0: i32) -> (i32, i32) {
    %c0_i32 = arith.constant 0 : i32
    %c0_i32_0 = arith.constant 0 : i32
    %c0_i32_1 = arith.constant 0 : i32
    return %c0_i32, %c0_i32_0 : i32, i32
  }
  func.func @transform_7(%arg0: i32) -> (i32, i32) {
    %c0_i32 = arith.constant 0 : i32
    %c0_i32_0 = arith.constant 0 : i32
    %c0_i32_1 = arith.constant 0 : i32
    return %c0_i32, %c0_i32_0 : i32, i32
  }
  func.func @transform_8(%arg0: i32) -> (i32, i32) {
    %c0_i32 = arith.constant 0 : i32
    %c0_i32_0 = arith.constant 0 : i32
    %c0_i32_1 = arith.constant 0 : i32
    return %c0_i32, %c0_i32_0 : i32, i32
  }
  func.func @transform_9(%arg0: i32) -> (i32, i32, i32) {
    %c0_i32 = arith.constant 0 : i32
    %c0_i32_0 = arith.constant 0 : i32
    %c0_i32_1 = arith.constant 0 : i32
    return %arg0, %c0_i32, %c0_i32_0 : i32, i32, i32
  }
}

</mosaic_0001>

<bundles_post_ra>
// kernel: tpu_custom_call.1
= control target key start
LH: loop header
LB: loop body
LE: loop exit
PB: predicated region body
PF: predicated region fallthrough
CT: control target
= control target key end

     0   :  { %14 = vsyncpa [#allocation5], 0  ;;  %s4892_s0 = inlined_call_operand.vmem [shape: f32[2,64,256], index: 0, kind: input, shape index: {}]   ;;  %s4893_s1 = inlined_call_operand.vmem [shape: f32[4,256], index: 1, kind: input, shape index: {}]   ;;  %s4894_s2 = inlined_call_operand.vmem [shape: f32[32,64], index: 2, kind: input, shape index: {}]   ;;  %s4895_s3 = inlined_call_operand.vmem [shape: f32[64,32], index: 3, kind: input, shape index: {}]   ;;  %s4896_s4 = inlined_call_operand.vmem [shape: f32[64,1], index: 4, kind: input, shape index: {}]   ;;  %s4897_s5 = inlined_call_operand.vmem [shape: f32[64,1], index: 5, kind: input, shape index: {}]   ;;  %s4898_s6 = inlined_call_operand.vmem [shape: bf16[192,64], index: 6, kind: input, shape index: {}]   ;;  %s4899_s7 = inlined_call_operand.vmem [shape: bf16[64,64], index: 7, kind: input, shape index: {}]   ;;  %s4900_s8 = inlined_call_operand.vmem [shape: f32[64,1], index: 8, kind: input, shape index: {}]   ;;  %s4901_s9 = inlined_call_operand.hbm [shape: f32[2,64,256], index: 9, kind: output, shape index: {}]  }
   0x1   :  { %16 = vsyncpa [#allocation5 + $0x1], 0  ;;  %s3766_s30 = smov 0   ;;  %s3768_s10 = smov 0  }
   0x2   :  { %s3770_s11 = smov 0   ;;  %s3772_s12 = smov 0  }
   0x3 LB: > { %s3787_s13 = sadd.s32 4294967295, %s3704_s12   ;;  %s3041_s14 = sadd.s32 4294967294, %s3704_s12   ;;  %s3704_s12 = sphi %s3772_s12, %s5036_s12   ;;  %s3700_s11 = sphi %s3770_s11, %s5035_s11   ;;  %s3696_s10 = sphi %s3768_s10, %s5034_s10   ;;  %s3692_s30 = sphi %s3766_s30, %s5033_s30  }
   0x4   : > { %s3791_s15 = sadd.s32 1, %s3704_s12   ;;  %s223_s16 = sadd.s32 1, %s3700_s11 }
   0x5   : > { %s220_s17 = ssub.s32 %s3704_s12, %s3791_s15  ;;  %p233_p0 = scmp.ne.s32.totalorder %s3700_s11, %s3696_s10 }
   0x6   : > { %p221_p1 = scmp.eq.s32.totalorder %s220_s17, 0  ;;  %p234_p2 = scmp.eq.s32.totalorder %s3787_s13, 1 }
   0x7   : > { %p239_p3 = scmp.ne.s32.totalorder %s3696_s10, %s3692_s30  ;;  %p240_p4 = scmp.eq.s32.totalorder %s3041_s14, 1 }
   0x8   : > { %s3802_s18 = scalar_select %p221_p1, %s3700_s11, %s223_s16  }
   0x9   : > { %p3804_p5 = por %p234_p2, %p233_p0  ;;  %p3808_p6 = por %p240_p4, %p239_p3 }
   0xa   : > { %p3044_p7 = scmp.ge.s32.totalorder %s3704_s12, 1  ;;  %p290_p8 = scmp.lt.s32.totalorder %s3704_s12, 3 }
   0xc   : > { %p291_p9 = pnand %p3044_p7, %p290_p8 }
   0xe   : > { %294 = sbr.rel (%p291_p9) target bundleno = 2602 (0xa2a), region = 56 }
  0x15   : > { %s323_s21 = sand.u32 1, %s3696_s10   ;;  %v3818_v0 = vld [vmem:[%s4893_s1] sm:$0xff]  ;;  %p326_p10 = scmp.lt.s32.totalorder %s3787_s13, 1  ;;  %vm525_vm0 = vcmask 523264   ;;  %v350_v56 = vld [vmem:[%s4894_s2 + $0x8] sm:$0xff]  ;;  %v351_v58 = vld [vmem:[%s4894_s2 + $0x10] sm:$0xff] }
  0x16   : > { %s3823_s24 = sshll.u32 %s323_s21, 7  ;;  %v3827_v1 = vcombine.high %v3818_v0, %v3818_v0  ;;  %v349_v34 = vld [vmem:[%s4894_s2] sm:$0xff]  ;;  %v352_v60 = vld [vmem:[%s4894_s2 + $0x18] sm:$0xff]  ;;  %vm732_vm1 = vcmask 261120   ;;  %vm1112_vm2 = vcmask 1043456   ;;  %vm1087_vm3 = vcmask 31744  }
  0x17   : > { %s327_s25 = scalar_select %p326_p10, %s3787_s13, 1 }
  0x18   : > { %380 = vmatprep.subr.mxu0 %v3827_v1  ;;  %3355 = vmatprep.subr.mxu1 %v3827_v1  ;;  %s4162_s14 = scalar_lea.vmem [#allocation4], %s3823_s24  ;;  %s4164_s16 = smov 0  }
  0x19   : > { %381 = vmatpush1.xpose.msra.mxu0 %v3818_v0  ;;  %3356 = vmatpush1.xpose.msra.mxu1 %v3818_v0  ;;  %s3169_s26 = sshll.u32 %s327_s25, 7 }
  0x1a   : > { %s3837_s29 = scalar_lea.vmem %s4892_s0, %s3169_s26  ;;  %3072 = vmatprep.subr.msk.mxu0 %vm1112_vm2, %v3827_v1 }
  0x1b   : > { %v3840_v2 = vld [vmem:[%s3837_s29 + $0x8] sm:$0xff]  ;;  %v3843_v3 = vld [vmem:[%s3837_s29 + $0x38] sm:$0xff]  ;;  %v3846_v4 = vld [vmem:[%s3837_s29] sm:$0xff] }
  0x1c   : > { %4948 = vst [vmem:[#allocation7_spill] sm:$0xff] %v3840_v2  ;;  %4949 = vst [vmem:[#allocation8_spill] sm:$0xff] %v3843_v3  ;;  %444 = vmatprep.mubr.f32.mxu0 %v3840_v2  ;;  %459 = vmatprep.mubr.f32.mxu1 %v3843_v3  ;;  %v3851_v5 = vld [vmem:[%s3837_s29 + $0x30] sm:$0xff]  ;;  %v3854_v6 = vld [vmem:[%s3837_s29 + $0x18] sm:$0xff]  ;;  %v362_v18 = vmul.f32 %v3840_v2, %v3840_v2  ;;  %v361_v19 = vmul.f32 %v3846_v4, %v3846_v4 }
  0x1d   : > { %4950 = vst [vmem:[#allocation9_spill] sm:$0xff] %v3846_v4  ;;  %4951 = vst [vmem:[#allocation10_spill] sm:$0xff] %v3851_v5  ;;  %v3857_v7 = vld [vmem:[%s3837_s29 + $0x48] sm:$0xff]  ;;  %445 = vmatmul.mubr.f32.vlgmr.msra.gmra.mrb[0].mxu0 %v3846_v4  ;;  %460 = vmatmul.mubr.f32.vlgmr.msra.gmra.mrb[0].mxu1 %v3851_v5  ;;  %v3864_v8 = vld [vmem:[%s3837_s29 + $0x10] sm:$0xff]  ;;  %v364_v20 = vmul.f32 %v3854_v6, %v3854_v6  ;;  %v368_v24 = vmul.f32 %v3843_v3, %v3843_v3 }
  0x1e   : > { %4952 = vst [vmem:[#allocation11_spill] sm:$0xff] %v3854_v6  ;;  %4953 = vst [vmem:[#allocation12_spill] sm:$0xff] %v3857_v7  ;;  %449 = vmatprep.mubr.f32.mxu0 %v3854_v6  ;;  %464 = vmatprep.mubr.f32.mxu1 %v3857_v7  ;;  %v3867_v9 = vld [vmem:[%s3837_s29 + $0x40] sm:$0xff]  ;;  %v3870_v10 = vld [vmem:[%s3837_s29 + $0x58] sm:$0xff]  ;;  %v363_v21 = vmul.f32 %v3864_v8, %v3864_v8  ;;  %v367_v25 = vmul.f32 %v3851_v5, %v3851_v5 }
  0x1f   : > { %4954 = vst [vmem:[#allocation13_spill] sm:$0xff] %v3864_v8  ;;  %4955 = vst [vmem:[#allocation14_spill] sm:$0xff] %v3867_v9  ;;  %v3873_v11 = vld [vmem:[%s3837_s29 + $0x28] sm:$0xff]  ;;  %v3876_v12 = vld [vmem:[%s3837_s29 + $0x50] sm:$0xff]  ;;  %v370_v26 = vmul.f32 %v3857_v7, %v3857_v7  ;;  %v369_v27 = vmul.f32 %v3867_v9, %v3867_v9  ;;  %v372_v28 = vmul.f32 %v3870_v10, %v3870_v10  ;;  %3073 = vmatpush1.msk.msra.mxu0 %vm1112_vm2, %v3818_v0 }
  0x20   : > { %4956 = vst [vmem:[#allocation15_spill] sm:$0xff] %v3870_v10  ;;  %4957 = vst [vmem:[#allocation16_spill] sm:$0xff] %v3873_v11  ;;  %v3879_v13 = vld [vmem:[%s3837_s29 + $0x20] sm:$0xff]  ;;  %v3886_v14 = vld [vmem:[%s3837_s29 + $0x68] sm:$0xff]  ;;  %v366_v22 = vmul.f32 %v3873_v11, %v3873_v11  ;;  %v371_v29 = vmul.f32 %v3876_v12, %v3876_v12 }
  0x21   : > { %4958 = vst [vmem:[#allocation17_spill] sm:$0xff] %v3876_v12  ;;  %4959 = vst [vmem:[#allocation18_spill] sm:$0xff] %v3879_v13  ;;  %450 = vmatmul.mubr.f32.gmra.mrb[2].mxu0 %v3864_v8  ;;  %465 = vmatmul.mubr.f32.gmra.mrb[2].mxu1 %v3867_v9  ;;  %v3892_v15 = vld [vmem:[%s3837_s29 + $0x60] sm:$0xff]  ;;  %v3895_v16 = vld [vmem:[%s3837_s29 + $0x78] sm:$0xff]  ;;  %v365_v23 = vmul.f32 %v3879_v13, %v3879_v13  ;;  %v374_v30 = vmul.f32 %v3886_v14, %v3886_v14 }
  0x22   : > { %469 = vmatprep.mubr.f32.mxu1 %v3870_v10  ;;  %454 = vmatprep.mubr.f32.mxu0 %v3873_v11  ;;  %4960 = vst [vmem:[#allocation19_spill] sm:$0xff] %v3886_v14  ;;  %4961 = vst [vmem:[#allocation20_spill] sm:$0xff] %v3892_v15  ;;  %v3900_v17 = vld [vmem:[%s3837_s29 + $0x70] sm:$0xff]  ;;  %v373_v31 = vmul.f32 %v3892_v15, %v3892_v15  ;;  %v376_v32 = vmul.f32 %v3895_v16, %v3895_v16 }
  0x23   : > { %4962 = vst [vmem:[#allocation21_spill] sm:$0xff] %v3895_v16  ;;  %4963 = vst [vmem:[#allocation22_spill] sm:$0xff] %v3900_v17  ;;  %v375_v33 = vmul.f32 %v3900_v17, %v3900_v17 }
  0x25   : > { %470 = vmatmul.mubr.f32.gmra.mrb[4].mxu1 %v3876_v12  ;;  %455 = vmatmul.mubr.f32.gmra.mrb[4].mxu0 %v3879_v13 }
  0x26   : > { %474 = vmatprep.mubr.f32.mxu1 %v3886_v14 }
  0x29   : > { %475 = vmatmul.mubr.f32.gmra.mrb[6].mxu1 %v3892_v15 }
  0x2a   : > { %479 = vmatprep.mubr.f32.mxu1 %v3895_v16 }
  0x2d   : > { %480 = vmatmul.mubr.f32.gmra.mrb[8].mxu1 %v3900_v17 }
  0x2e   : > { %484 = vmatprep.mubr.f32.mxu1 %v362_v18 }
  0x31   : > { %485 = vmatmul.mubr.f32.gmra.mrb[10].mxu1 %v361_v19 }
  0x32   : > { %489 = vmatprep.mubr.f32.mxu1 %v364_v20 }
  0x35   : > { %490 = vmatmul.mubr.f32.gmra.mrb[12].mxu1 %v363_v21 }
  0x36   : > { %494 = vmatprep.mubr.f32.mxu1 %v366_v22 }
  0x39   : > { %495 = vmatmul.mubr.f32.gmra.mrb[14].mxu1 %v365_v23 }
  0x3a   : > { %499 = vmatprep.mubr.f32.mxu1 %v368_v24 }
  0x3d   : > { %500 = vmatmul.mubr.f32.gmra.mrb[16].mxu1 %v367_v25 }
  0x3e   : > { %504 = vmatprep.mubr.f32.mxu1 %v370_v26 }
  0x41   : > { %505 = vmatmul.mubr.f32.gmra.mrb[18].mxu1 %v369_v27 }
  0x42   : > { %509 = vmatprep.mubr.f32.mxu1 %v372_v28 }
  0x45   : > { %510 = vmatmul.mubr.f32.gmra.mrb[20].mxu1 %v371_v29 }
  0x46   : > { %514 = vmatprep.mubr.f32.mxu1 %v374_v30 }
  0x49   : > { %515 = vmatmul.mubr.f32.gmra.mrb[22].mxu1 %v373_v31 }
  0x4a   : > { %519 = vmatprep.mubr.f32.mxu1 %v376_v32  ;;  %v3958_v32 = vld [vmem:[%s4895_s3] sm:$0xff] }
  0x4d   : > { %520 = vmatmul.mubr.f32.gmra.mrb[24].mxu1 %v375_v33  ;;  %v967_v33 = vld [vmem:[%s4896_s4] sm:$0xff] }
  0x4e   : > { %3239 = vmatprep.mubr.msk.f32.mxu1 %vm525_vm0, %v349_v34 }
  0xf0   : > { %v446_v35 = vpop.f32.mrb[0].mxu0  ;;  %v461_v36 = vpop.f32.mrb[0].mxu1 }
  0xf1   : > { %v448_v37 = vpop.f32.mrb[1].mxu0  ;;  %v463_v38 = vpop.f32.mrb[1].mxu1 }
  0xf2   : > { %v969_v37 = vld [vmem:[%s4896_s4 + $0x10] sm:$0xff]  ;;  %v1024_v38 = vld [vmem:[%s4897_s5 + $0x8] sm:$0xff] }
  0xf4   : > { %v451_v39 = vpop.f32.mrb[2].mxu0  ;;  %v466_v40 = vpop.f32.mrb[2].mxu1 }
  0xf5   : > { %v3307_v41 = vpack.c.bf16 %v451_v39, %v446_v35  ;;  %v453_v42 = vpop.f32.mrb[3].mxu0  ;;  %v468_v43 = vpop.f32.mrb[3].mxu1  ;;  %v4902_v35 = vmov 0   ;;  %v970_v39 = vld [vmem:[%s4896_s4 + $0x18] sm:$0xff] }
  0xf6   : > { %3417 = vset.pattern.permute.xlu0 %v4902_v35  ;;  %3418 = vset.pattern.permute.xlu1 %v4902_v35  ;;  %v1026_v42 = vld [vmem:[%s4897_s5 + $0x18] sm:$0xff]  ;;  %v972_v43 = vld [vmem:[%s4896_s4 + $0x28] sm:$0xff] }
  0xf7   : > { %3308 = vmatprep.subr.bf16.mxu1 %v3307_v41  ;;  %977 = vperm.xlu0 %3417, %v967_v33  }
  0xf8   : > { %3310 = vmatpush3.bf16.msra.mxu1 %v3307_v41  ;;  %v456_v44 = vpop.f32.mrb[4].mxu0  ;;  %v471_v45 = vpop.f32.mrb[4].mxu1  ;;  %v971_v41 = vld [vmem:[%s4896_s4 + $0x20] sm:$0xff] }
  0xf9   : > { %v3311_v46 = vpack.c.bf16 %v461_v36, %v456_v44  ;;  %v458_v47 = vpop.f32.mrb[5].mxu0  ;;  %v3315_v48 = vpack.c.bf16 %v471_v45, %v466_v40  ;;  %v473_v49 = vpop.f32.mrb[5].mxu1  ;;  %v968_v36 = vld [vmem:[%s4896_s4 + $0x8] sm:$0xff]  ;;  %v1025_v40 = vld [vmem:[%s4897_s5 + $0x10] sm:$0xff]  ;;  %v1027_v44 = vld [vmem:[%s4897_s5 + $0x20] sm:$0xff] }
  0xfa   : > { %v973_v45 = vld [vmem:[%s4896_s4 + $0x30] sm:$0xff]  ;;  %v974_v47 = vld [vmem:[%s4896_s4 + $0x38] sm:$0xff] }
  0xfb   : > { %3312 = vmatprep.subr.bf16.mxu1 %v3311_v46  ;;  %982 = vperm.xlu0 %3417, %v968_v36   ;;  %v1030_v49 = vld [vmem:[%s4897_s5 + $0x38] sm:$0xff] }
  0xfc   : > { %3314 = vmatpush3.bf16.msra.mxu1 %v3311_v46  ;;  %v476_v50 = vpop.f32.mrb[6].mxu1  ;;  %v1028_v46 = vld [vmem:[%s4897_s5 + $0x28] sm:$0xff] }
  0xfd   : > { %3316 = vmatprep.subr.bf16.mxu1 %v3315_v48  ;;  %v478_v51 = vpop.f32.mrb[7].mxu1 }
  0xff   : > { %1046 = vperm.xlu0 %3417, %v1024_v38  }
 0x100   : > { %3318 = vmatpush3.bf16.msra.mxu1 %v3315_v48  ;;  %v481_v52 = vpop.f32.mrb[8].mxu1  ;;  %v1029_v48 = vld [vmem:[%s4897_s5 + $0x30] sm:$0xff] }
 0x101   : > { %v3319_v53 = vpack.c.bf16 %v481_v52, %v476_v50  ;;  %v483_v54 = vpop.f32.mrb[9].mxu1 }
 0x103   : > { %3320 = vmatprep.subr.bf16.mxu1 %v3319_v53  ;;  %1051 = vperm.xlu0 %3417, %v1025_v40  }
 0x104   : > { %3322 = vmatpush3.bf16.msra.mxu1 %v3319_v53  ;;  %v486_v55 = vpop.f32.mrb[10].mxu1 }
 0x105   : > { %v488_v57 = vpop.f32.mrb[11].mxu1 }
 0x107   : > { %3240 = vmatmul.mubr.msk.f32.vlgmr.msra.gmra.mrb[26].mxu1 %vm525_vm0, %v350_v56  ;;  %1056 = vperm.xlu0 %3417, %v1026_v42   ;;  %v354_v42 = vld [vmem:[%s4895_s3 + $0x8] sm:$0xff] }
 0x108   : > { %v491_v59 = vpop.f32.mrb[12].mxu1  ;;  %3242 = vmatprep.mubr.msk.f32.mxu1 %vm525_vm0, %v351_v58 }
 0x109   : > { %v3323_v61 = vpack.c.bf16 %v491_v59, %v486_v55  ;;  %v493_v62 = vpop.f32.mrb[13].mxu1 }
 0x10b   : > { %3324 = vmatprep.subr.bf16.mxu1 %v3323_v61  ;;  %3243 = vmatmul.mubr.msk.f32.gmra.mrb[28].mxu1 %vm525_vm0, %v352_v60 }
 0x10c   : > { %v496_v63 = vpop.f32.mrb[14].mxu1  ;;  %3326 = vmatpush3.bf16.msra.mxu1 %v3323_v61  ;;  %3261 = vmatprep.mubr.msk.f32.mxu1 %vm525_vm0, %v349_v34  ;;  %v1023_v34 = vld [vmem:[%s4897_s5] sm:$0xff] }
 0x10d   : > { %v498_v18 = vpop.f32.mrb[15].mxu1  ;;  %1041 = vperm.xlu1 %3418, %v1023_v34   ;;  %1061 = vperm.xlu0 %3417, %v1027_v44   ;;  %v356_v44 = vld [vmem:[%s4895_s3 + $0x18] sm:$0xff] }
 0x110   : > { %v501_v19 = vpop.f32.mrb[16].mxu1 }
 0x111   : > { %v3327_v20 = vpack.c.bf16 %v501_v19, %v496_v63  ;;  %v503_v21 = vpop.f32.mrb[17].mxu1  ;;  %987 = vperm.xlu1 %3418, %v969_v37   ;;  %1066 = vperm.xlu0 %3417, %v1028_v46   ;;  %v358_v46 = vld [vmem:[%s4895_s3 + $0x28] sm:$0xff] }
 0x113   : > { %3328 = vmatprep.subr.bf16.mxu1 %v3327_v20 }
 0x114   : > { %v506_v22 = vpop.f32.mrb[18].mxu1  ;;  %3330 = vmatpush3.bf16.msra.mxu1 %v3327_v20 }
 0x115   : > { %v508_v23 = vpop.f32.mrb[19].mxu1  ;;  %992 = vperm.xlu1 %3418, %v970_v39   ;;  %1071 = vperm.xlu0 %3417, %v1029_v48   ;;  %v360_v48 = vld [vmem:[%s4895_s3 + $0x38] sm:$0xff] }
 0x118   : > { %v511_v24 = vpop.f32.mrb[20].mxu1 }
 0x119   : > { %v3331_v25 = vpack.c.bf16 %v511_v24, %v506_v22  ;;  %v513_v26 = vpop.f32.mrb[21].mxu1  ;;  %997 = vperm.xlu1 %3418, %v971_v41  }
 0x11b   : > { %3332 = vmatprep.subr.bf16.mxu1 %v3331_v25 }
 0x11c   : > { %v516_v27 = vpop.f32.mrb[22].mxu1  ;;  %3334 = vmatpush3.bf16.msra.mxu1 %v3331_v25 }
 0x11d   : > { %v518_v28 = vpop.f32.mrb[23].mxu1  ;;  %1002 = vperm.xlu1 %3418, %v972_v43   ;;  %v355_v43 = vld [vmem:[%s4895_s3 + $0x10] sm:$0xff] }
 0x120   : > { %v521_v29 = vpop.f32.mrb[24].mxu1 }
 0x121   : > { %v3335_v30 = vpack.c.bf16 %v521_v29, %v516_v27  ;;  %v523_v31 = vpop.f32.mrb[25].mxu1  ;;  %1007 = vperm.xlu1 %3418, %v973_v45   ;;  %v357_v45 = vld [vmem:[%s4895_s3 + $0x20] sm:$0xff] }
 0x123   : > { %3336 = vmatprep.subr.bf16.mxu1 %v3335_v30 }
 0x124   : > { %3338 = vmatpush3.bf16.msra.mxu1 %v3335_v30 }
 0x125   : > { %1012 = vperm.xlu1 %3418, %v974_v47   ;;  %v359_v47 = vld [vmem:[%s4895_s3 + $0x30] sm:$0xff] }
 0x127   : > { %3262 = vmatmul.mubr.msk.f32.vlgmr.msra.gmra.mrb[30].mxu1 %vm525_vm0, %v350_v56 }
 0x128   : > { %3264 = vmatprep.mubr.msk.f32.mxu1 %vm525_vm0, %v351_v58 }
 0x129   : > { %1076 = vperm.xlu1 %3418, %v1030_v49  }
 0x12b   : > { %3265 = vmatmul.mubr.msk.f32.gmra.mrb[32].mxu1 %vm525_vm0, %v352_v60 }
 0x12c   : > { %3275 = vmatprep.mubr.msk.f32.mxu1 %vm732_vm1, %v3958_v32 }
 0x18c   : > { %v1042_v49 = vpop.permute.xlu1 %1041 }
 0x1da   : > { %v3241_v50 = vpop.f32.mrb[26].mxu1 }
 0x1db   : > { %v624_v51 = vmul.f32 0.0078125, %v3241_v50  ;;  %v604_v52 = vpop.f32.mrb[27].mxu1  ;;  %v988_v50 = vpop.permute.xlu1 %987 }
 0x1dc   : > { %v623_v53 = vmul.f32 0.0078125, %v604_v52 }
 0x1dd   : > { %v717_v61 = vmul.f32 %v624_v51, %v624_v51 }
 0x1de   : > { %v3347_v54 = vpack.c.bf16 %v624_v51, %v623_v53  ;;  %v3244_v55 = vpop.f32.mrb[28].mxu1  ;;  %v716_v18 = vmul.f32 %v623_v53, %v623_v53  ;;  %v978_v51 = vpop.permute.xlu0 %977 }
 0x1df   : > { %v626_v56 = vmul.f32 0.0078125, %v3244_v55  ;;  %v614_v57 = vpop.f32.mrb[29].mxu1  ;;  %v993_v53 = vpop.permute.xlu1 %992 }
 0x1e0   : > { %v625_v58 = vmul.f32 0.0078125, %v614_v57 }
 0x1e1   : > { %v719_v23 = vmul.f32 %v626_v56, %v626_v56 }
 0x1e2   : > { %v3351_v59 = vpack.c.bf16 %v626_v56, %v625_v58  ;;  %v718_v27 = vmul.f32 %v625_v58, %v625_v58  ;;  %v983_v56 = vpop.permute.xlu0 %982 }
 0x1fa   : > { %v3263_v60 = vpop.f32.mrb[30].mxu1 }
 0x1fb   : > { %v713_v62 = vmul.f32 0.0078125, %v3263_v60  ;;  %v693_v63 = vpop.f32.mrb[31].mxu1 }
 0x1fc   : > { %v712_v19 = vmul.f32 0.0078125, %v693_v63 }
 0x1fd   : > { %v721_v20 = vsub.f32 %v713_v62, %v717_v61 }
 0x1fe   : > { %v720_v21 = vsub.f32 %v712_v19, %v716_v18  ;;  %v3266_v22 = vpop.f32.mrb[32].mxu1  ;;  %v1047_v18 = vpop.permute.xlu0 %1046 }
 0x1ff   : > { %v725_v24 = vadd.f32 1e-05, %v721_v20  ;;  %v715_v25 = vmul.f32 0.0078125, %v3266_v22  ;;  %v703_v26 = vpop.f32.mrb[33].mxu1 }
 0x200   : > { %v724_v28 = vadd.f32 1e-05, %v720_v21  ;;  %v714_v29 = vmul.f32 0.0078125, %v703_v26 }
 0x201   : > { %3432 = vrsqrt.f32 %v725_v24  ;;  %v723_v30 = vsub.f32 %v715_v25, %v719_v23 }
 0x202   : > { %3434 = vrsqrt.f32 %v724_v28  ;;  %v722_v31 = vsub.f32 %v714_v29, %v718_v27  ;;  %v1052_v27 = vpop.permute.xlu0 %1051 }
 0x203   : > { %v727_v33 = vadd.f32 1e-05, %v723_v30 }
 0x204   : > { %v726_v34 = vadd.f32 1e-05, %v722_v31 }
 0x205   : > { %3436 = vrsqrt.f32 %v727_v33 }
 0x206   : > { %3438 = vrsqrt.f32 %v726_v34 }
 0x20b   : > { %v3433_v36 = vpop.eup %3432 }
 0x20c   : > { %v3435_v37 = vpop.eup %3434 }
 0x20d   : > { %v3339_v38 = vpack.c.bf16 %v3433_v36, %v3435_v37 }
 0x20f   : > { %v3437_v39 = vpop.eup %3436  ;;  %3340 = vmatprep.subr.bf16.mxu1 %v3339_v38 }
 0x210   : > { %v3439_v40 = vpop.eup %3438  ;;  %3342 = vmatpush3.bf16.msra.mxu1 %v3339_v38 }
 0x211   : > { %v3343_v41 = vpack.c.bf16 %v3437_v39, %v3439_v40  ;;  %v1057_v39 = vpop.permute.xlu0 %1056 }
 0x213   : > { %3344 = vmatprep.subr.bf16.mxu1 %v3343_v41 }
 0x214   : > { %3346 = vmatpush3.bf16.msra.mxu1 %v3343_v41 }
 0x215   : > { %3348 = vmatprep.subr.bf16.mxu1 %v3347_v54 }
 0x217   : > { %3276 = vmatmul.mubr.msk.f32.vlgmr.msra.gmra.mrb[34].mxu1 %vm732_vm1, %v354_v42 }
 0x218   : > { %3350 = vmatpush3.bf16.msra.mxu1 %v3347_v54  ;;  %3278 = vmatprep.mubr.msk.f32.mxu1 %vm732_vm1, %v355_v43 }
 0x219   : > { %3352 = vmatprep.subr.bf16.mxu1 %v3351_v59 }
 0x21b   : > { %3279 = vmatmul.mubr.msk.f32.gmra.mrb[36].mxu1 %vm732_vm1, %v356_v44 }
 0x21c   : > { %3354 = vmatpush3.bf16.msra.mxu1 %v3351_v59  ;;  %3281 = vmatprep.mubr.msk.f32.mxu1 %vm732_vm1, %v357_v45  ;;  %v998_v59 = vpop.permute.xlu1 %997 }
 0x21d   : > { %3082 = vmatprep.subr.msk.mxu1 %vm1112_vm2, %v3827_v1 }
 0x21f   : > { %3282 = vmatmul.mubr.msk.f32.gmra.mrb[38].mxu1 %vm732_vm1, %v358_v46 }
 0x220   : > { %3284 = vmatprep.mubr.msk.f32.mxu1 %vm732_vm1, %v359_v47  ;;  %v1003_v63 = vpop.permute.xlu1 %1002 }
 0x223   : > { %3285 = vmatmul.mubr.msk.f32.gmra.mrb[40].mxu1 %vm732_vm1, %v360_v48 }
 0x224   : > { %3295 = vmatprep.mubr.msk.f32.mxu1 %vm732_vm1, %v3958_v32  ;;  %v3711_v32 = vmov 0.0   ;;  %v1008_v26 = vpop.permute.xlu1 %1007 }
 0x225   : > { %1181 = vmatprep.mubr.f32.mxu0 %v3711_v32 }
 0x227   : > { %3296 = vmatmul.mubr.msk.f32.vlgmr.msra.gmra.mrb[42].mxu1 %vm732_vm1, %v354_v42 }
 0x228   : > { %3298 = vmatprep.mubr.msk.f32.mxu1 %vm732_vm1, %v355_v43  ;;  %3083 = vmatpush1.msk.msra.mxu1 %vm1112_vm2, %v3818_v0  ;;  %v1013_v38 = vpop.permute.xlu1 %1012 }
 0x22b   : > { %3299 = vmatmul.mubr.msk.f32.gmra.mrb[44].mxu1 %vm732_vm1, %v356_v44 }
 0x22c   : > { %3301 = vmatprep.mubr.msk.f32.mxu1 %vm732_vm1, %v357_v45 }
 0x22f   : > { %3302 = vmatmul.mubr.msk.f32.gmra.mrb[46].mxu1 %vm732_vm1, %v358_v46 }
 0x230   : > { %3304 = vmatprep.mubr.msk.f32.mxu1 %vm732_vm1, %v359_v47 }
 0x233   : > { %3305 = vmatmul.mubr.msk.f32.gmra.mrb[48].mxu1 %vm732_vm1, %v360_v48 }
 0x234   : > { %1318 = vmatprep.mubr.f32.mxu1 %v3711_v32 }
 0x2ea   : > { %v3277_v52 = vpop.f32.mrb[34].mxu1 }
 0x2eb   : > { %v823_v54 = vpop.f32.mrb[35].mxu1  ;;  %v1016_v58 = vmul.f32 %v3277_v52, %v983_v56  ;;  %v1077_v56 = vpop.permute.xlu1 %1076 }
 0x2ec   : > { %v1015_v55 = vmul.f32 %v978_v51, %v823_v54 }
 0x2ee   : > { %3074 = vmatmul.mubr.msk.f32.vlgmr.msra.gmra.mrb[6].mxu0 %vm1087_vm3, %v1015_v55  ;;  %v3280_v1 = vpop.f32.mrb[36].mxu1 }
 0x2ef   : > { %1187 = vmatprep.mubr.f32.mxu0 %v3711_v32  ;;  %v833_v57 = vpop.f32.mrb[37].mxu1  ;;  %v1018_v20 = vmul.f32 %v3280_v1, %v993_v53 }
 0x2f0   : > { %v1017_v61 = vmul.f32 %v988_v50, %v833_v57  ;;  %v1062_v50 = vpop.permute.xlu0 %1061 }
 0x2f2   : > { %3075 = vmatmul.mubr.msk.f32.gmra.mrb[8].mxu0 %vm1087_vm3, %v1016_v58  ;;  %v3283_v0 = vpop.f32.mrb[38].mxu1 }
 0x2f3   : > { %1193 = vmatprep.mubr.f32.mxu0 %v3711_v32  ;;  %v843_v60 = vpop.f32.mrb[39].mxu1  ;;  %v1020_v33 = vmul.f32 %v3283_v0, %v1003_v63 }
 0x2f4   : > { %v1019_v24 = vmul.f32 %v998_v59, %v843_v60  ;;  %v1067_v53 = vpop.permute.xlu0 %1066 }
 0x2f6   : > { %3076 = vmatmul.mubr.msk.f32.gmra.mrb[10].mxu0 %vm1087_vm3, %v1017_v61  ;;  %v3286_v62 = vpop.f32.mrb[40].mxu1 }
 0x2f7   : > { %v853_v19 = vpop.f32.mrb[41].mxu1  ;;  %1199 = vmatprep.mubr.f32.mxu0 %v3711_v32  ;;  %v1022_v44 = vmul.f32 %v3286_v62, %v1013_v38 }
 0x2f8   : > { %v1021_v42 = vmul.f32 %v1008_v26, %v853_v19 }
 0x2fa   : > { %v3297_v21 = vpop.f32.mrb[42].mxu1  ;;  %3077 = vmatmul.mubr.msk.f32.gmra.mrb[12].mxu0 %vm1087_vm3, %v1018_v20 }
 0x2fb   : > { %v1032_v22 = vmul.f32 %v3297_v21, %v1016_v58  ;;  %v928_v23 = vpop.f32.mrb[43].mxu1  ;;  %1205 = vmatprep.mubr.f32.mxu0 %v3711_v32 }
 0x2fc   : > { %v1031_v25 = vmul.f32 %v1015_v55, %v928_v23  ;;  %v1072_v55 = vpop.permute.xlu0 %1071 }
 0x2fd   : > { %v1080_v36 = vsub.f32 %v1047_v18, %v1032_v22 }
 0x2fe   : > { %v1079_v28 = vsub.f32 %v1042_v49, %v1031_v25  ;;  %v3300_v29 = vpop.f32.mrb[44].mxu1  ;;  %3078 = vmatmul.mubr.msk.f32.gmra.mrb[14].mxu0 %vm1087_vm3, %v1019_v24 }
 0x2ff   : > { %v1034_v30 = vmul.f32 %v3300_v29, %v1018_v20  ;;  %v938_v31 = vpop.f32.mrb[45].mxu1  ;;  %1211 = vmatprep.mubr.f32.mxu0 %v3711_v32 }
 0x300   : > { %v1033_v34 = vmul.f32 %v1017_v61, %v938_v31  ;;  %3084 = vmatmul.mubr.msk.f32.vlgmr.msra.gmra.mrb[50].mxu1 %vm1087_vm3, %v1079_v28 }
 0x301   : > { %1324 = vmatprep.mubr.f32.mxu1 %v3711_v32  ;;  %v1082_v51 = vsub.f32 %v1057_v39, %v1034_v30 }
 0x302   : > { %v3303_v37 = vpop.f32.mrb[46].mxu1  ;;  %3079 = vmatmul.mubr.msk.f32.gmra.mrb[16].mxu0 %vm1087_vm3, %v1020_v33  ;;  %v1081_v45 = vsub.f32 %v1052_v27, %v1033_v34 }
 0x303   : > { %v1036_v40 = vmul.f32 %v3303_v37, %v1020_v33  ;;  %v948_v41 = vpop.f32.mrb[47].mxu1  ;;  %1217 = vmatprep.mubr.f32.mxu0 %v3711_v32 }
 0x304   : > { %v1035_v43 = vmul.f32 %v1019_v24, %v948_v41  ;;  %3085 = vmatmul.mubr.msk.f32.gmra.mrb[52].mxu1 %vm1087_vm3, %v1080_v36 }
 0x305   : > { %1330 = vmatprep.mubr.f32.mxu1 %v3711_v32  ;;  %v1084_v54 = vsub.f32 %v1067_v53, %v1036_v40 }
 0x306   : > { %v3306_v46 = vpop.f32.mrb[48].mxu1  ;;  %3080 = vmatmul.mubr.msk.f32.gmra.mrb[18].mxu0 %vm1087_vm3, %v1021_v42  ;;  %v1083_v52 = vsub.f32 %v1062_v50, %v1035_v43 }
 0x307   : > { %v1038_v47 = vmul.f32 %v3306_v46, %v1022_v44  ;;  %v958_v48 = vpop.f32.mrb[49].mxu1  ;;  %1223 = vmatprep.mubr.f32.mxu0 %v3711_v32 }
 0x308   : > { %v1037_v49 = vmul.f32 %v1021_v42, %v958_v48  ;;  %3086 = vmatmul.mubr.msk.f32.gmra.mrb[54].mxu1 %vm1087_vm3, %v1081_v45 }
 0x309   : > { %1336 = vmatprep.mubr.f32.mxu1 %v3711_v32  ;;  %v1086_v57 = vsub.f32 %v1077_v56, %v1038_v47 }
 0x30a   : > { %3081 = vmatmul.mubr.msk.f32.gmra.mrb[20].mxu0 %vm1087_vm3, %v1022_v44  ;;  %v1085_v1 = vsub.f32 %v1072_v55, %v1037_v49 }
 0x30b   : > { %1559 = vmatprep.mubr.bf16.mxu0 %v4902_v35 }
 0x30c   : > { %3087 = vmatmul.mubr.msk.f32.gmra.mrb[56].mxu1 %vm1087_vm3, %v1082_v51 }
 0x30d   : > { %1342 = vmatprep.mubr.f32.mxu1 %v3711_v32 }
 0x310   : > { %3088 = vmatmul.mubr.msk.f32.gmra.mrb[58].mxu1 %vm1087_vm3, %v1083_v52 }
 0x311   : > { %1348 = vmatprep.mubr.f32.mxu1 %v3711_v32 }
 0x314   : > { %3089 = vmatmul.mubr.msk.f32.gmra.mrb[60].mxu1 %vm1087_vm3, %v1084_v54 }
 0x315   : > { %1354 = vmatprep.mubr.f32.mxu1 %v3711_v32 }
 0x318   : > { %3090 = vmatmul.mubr.msk.f32.gmra.mrb[62].mxu1 %vm1087_vm3, %v1085_v1 }
 0x319   : > { %1360 = vmatprep.mubr.f32.mxu1 %v3711_v32 }
 0x31c   : > { %3091 = vmatmul.mubr.msk.f32.gmra.mrb[64].mxu1 %vm1087_vm3, %v1086_v57 }
 0x3c1   : > { %v1183_v58 = vpop.f32.mrb[6].mxu0 }
 0x3c2   : > { %v1185_v59 = vpop.f32.mrb[7].mxu0  ;;  %v1367_v20 = vmul.f32 %v1183_v58, %v3846_v4 }
 0x3c3   : > { %v1368_v22 = vmul.f32 %v1185_v59, %v3840_v2 }
 0x3c5   : > { %v1189_v0 = vpop.f32.mrb[8].mxu0 }
 0x3c6   : > { %v1191_v60 = vpop.f32.mrb[9].mxu0  ;;  %v1369_v27 = vmul.f32 %v1189_v0, %v3864_v8 }
 0x3c7   : > { %v1370_v29 = vmul.f32 %v1191_v60, %v3854_v6 }
 0x3c9   : > { %v1195_v61 = vpop.f32.mrb[10].mxu0 }
 0x3ca   : > { %v1197_v62 = vpop.f32.mrb[11].mxu0  ;;  %v1371_v37 = vmul.f32 %v1195_v61, %v3879_v13 }
 0x3cb   : > { %v1372_v40 = vmul.f32 %v1197_v62, %v3873_v11 }
 0x3cd   : > { %v1201_v63 = vpop.f32.mrb[12].mxu0 }
 0x3ce   : > { %v1203_v18 = vpop.f32.mrb[13].mxu0  ;;  %v1373_v47 = vmul.f32 %v1201_v63, %v3851_v5 }
 0x3cf   : > { %v1374_v49 = vmul.f32 %v1203_v18, %v3843_v3 }
 0x3d1   : > { %v1207_v19 = vpop.f32.mrb[14].mxu0 }
 0x3d2   : > { %v1209_v21 = vpop.f32.mrb[15].mxu0  ;;  %v1375_v54 = vmul.f32 %v1207_v19, %v3867_v9 }
 0x3d3   : > { %v1320_v23 = vpop.f32.mrb[50].mxu1  ;;  %v1376_v1 = vmul.f32 %v1209_v21, %v3857_v7 }
 0x3d4   : > { %v1383_v24 = vadd.f32 %v1367_v20, %v1320_v23  ;;  %v1322_v32 = vpop.f32.mrb[51].mxu1 }
 0x3d5   : > { %v1384_v25 = vadd.f32 %v1368_v22, %v1322_v32  ;;  %v1213_v26 = vpop.f32.mrb[16].mxu0 }
 0x3d6   : > { %v1215_v28 = vpop.f32.mrb[17].mxu0  ;;  %v1377_v60 = vmul.f32 %v1213_v26, %v3876_v12 }
 0x3d7   : > { %v1326_v30 = vpop.f32.mrb[52].mxu1  ;;  %v1378_v61 = vmul.f32 %v1215_v28, %v3870_v10 }
 0x3d8   : > { %v1385_v31 = vadd.f32 %v1369_v27, %v1326_v30  ;;  %v1328_v33 = vpop.f32.mrb[53].mxu1 }
 0x3d9   : > { %v1386_v34 = vadd.f32 %v1370_v29, %v1328_v33  ;;  %v1219_v36 = vpop.f32.mrb[18].mxu0 }
 0x3da   : > { %v1423_v38 = vpack.c.bf16 %v1385_v31, %v1383_v24  ;;  %v1221_v39 = vpop.f32.mrb[19].mxu0  ;;  %v1379_v19 = vmul.f32 %v1219_v36, %v3892_v15 }
 0x3db   : > { %v1424_v41 = vpack.c.bf16 %v1386_v34, %v1384_v25  ;;  %v1332_v42 = vpop.f32.mrb[54].mxu1  ;;  %v1380_v21 = vmul.f32 %v1221_v39, %v3886_v14  ;;  %v3422_v39 = vld [vmem:[%s4898_s6 + $0x10] sm:$0xff]  }
 0x3dc   : > { %v1387_v43 = vadd.f32 %v1371_v37, %v1332_v42  ;;  %v1334_v44 = vpop.f32.mrb[55].mxu1  ;;  %v3420_v37 = vld [vmem:[%s4898_s6] sm:$0xff]   ;;  %v3425_v42 = vld [vmem:[%s4898_s6 + $0x28] sm:$0xff]  }
 0x3dd   : > { %v1388_v45 = vadd.f32 %v1372_v40, %v1334_v44  ;;  %v1225_v46 = vpop.f32.mrb[20].mxu0  ;;  %1527 = vmatprep.subr.bf16.mxu0 %v1424_v41  ;;  %v3423_v40 = vld [vmem:[%s4898_s6 + $0x18] sm:$0xff]   ;;  %v3424_v41 = vld [vmem:[%s4898_s6 + $0x20] sm:$0xff]  }
 0x3de   : > { %v1227_v48 = vpop.f32.mrb[21].mxu0  ;;  %1528 = vmatpush1.bf16.msra.mxu0 %v1423_v38  ;;  %v1381_v26 = vmul.f32 %v1225_v46, %v3900_v17  ;;  %v3421_v38 = vld [vmem:[%s4898_s6 + $0x8] sm:$0xff]   ;;  %v3427_v44 = vld [vmem:[%s4898_s6 + $0x38] sm:$0xff]  }
 0x3df   : > { %v1338_v50 = vpop.f32.mrb[56].mxu1  ;;  %v1382_v28 = vmul.f32 %v1227_v48, %v3895_v16  ;;  %v3429_v46 = vld [vmem:[%s4898_s6 + $0x48] sm:$0xff]   ;;  %v3431_v48 = vld [vmem:[%s4898_s6 + $0x58] sm:$0xff]  }
 0x3e0   : > { %v1389_v51 = vadd.f32 %v1373_v47, %v1338_v50  ;;  %v1340_v52 = vpop.f32.mrb[57].mxu1  ;;  %v3430_v47 = vld [vmem:[%s4898_s6 + $0x50] sm:$0xff]  }
 0x3e1   : > { %v1390_v53 = vadd.f32 %v1374_v49, %v1340_v52 }
 0x3e2   : > { %v1425_v55 = vpack.c.bf16 %v1389_v51, %v1387_v43  ;;  %v3426_v43 = vld [vmem:[%s4898_s6 + $0x30] sm:$0xff]  }
 0x3e3   : > { %v1426_v56 = vpack.c.bf16 %v1390_v53, %v1388_v45  ;;  %v1344_v57 = vpop.f32.mrb[58].mxu1  ;;  %v3428_v45 = vld [vmem:[%s4898_s6 + $0x40] sm:$0xff]  }
 0x3e4   : > { %v1391_v58 = vadd.f32 %v1375_v54, %v1344_v57  ;;  %v1346_v59 = vpop.f32.mrb[59].mxu1 }
 0x3e5   : > { %v1392_v0 = vadd.f32 %v1376_v1, %v1346_v59  ;;  %1529 = vmatprep.subr.bf16.mxu0 %v1426_v56 }
 0x3e6   : > { %1530 = vmatpush1.bf16.msra.mxu0 %v1425_v55 }
 0x3e7   : > { %v1350_v62 = vpop.f32.mrb[60].mxu1 }
 0x3e8   : > { %v1393_v63 = vadd.f32 %v1377_v60, %v1350_v62  ;;  %v1352_v18 = vpop.f32.mrb[61].mxu1 }
 0x3e9   : > { %v1394_v20 = vadd.f32 %v1378_v61, %v1352_v18 }
 0x3ea   : > { %v1427_v22 = vpack.c.bf16 %v1393_v63, %v1391_v58 }
 0x3eb   : > { %v1428_v23 = vpack.c.bf16 %v1394_v20, %v1392_v0  ;;  %v1356_v24 = vpop.f32.mrb[62].mxu1 }
 0x3ec   : > { %v1395_v32 = vadd.f32 %v1379_v19, %v1356_v24  ;;  %v1358_v25 = vpop.f32.mrb[63].mxu1 }
 0x3ed   : > { %v1396_v27 = vadd.f32 %v1380_v21, %v1358_v25  ;;  %1531 = vmatprep.subr.bf16.mxu0 %v1428_v23 }
 0x3ee   : > { %1532 = vmatpush1.bf16.msra.mxu0 %v1427_v22 }
 0x3ef   : > { %v1362_v29 = vpop.f32.mrb[64].mxu1 }
 0x3f0   : > { %v1397_v30 = vadd.f32 %v1381_v26, %v1362_v29  ;;  %v1364_v31 = vpop.f32.mrb[65].mxu1 }
 0x3f1   : > { %v1398_v33 = vadd.f32 %v1382_v28, %v1364_v31 }
 0x3f2   : > { %v1429_v34 = vpack.c.bf16 %v1397_v30, %v1395_v32 }
 0x3f3   : > { %v1430_v36 = vpack.c.bf16 %v1398_v33, %v1396_v27 }
 0x3f5   : > { %1533 = vmatprep.subr.bf16.mxu0 %v1430_v36 }
 0x3f6   : > { %1534 = vmatpush1.bf16.msra.mxu0 %v1429_v34 }
 0x3f9   : > { %3104 = vmatmul.mubr.msk.bf16.vlgmr.msra.gmra.mrb[24].mxu0 %vm525_vm0, %v3420_v37 }
 0x3fa   : > { %1569 = vmatprep.mubr.bf16.mxu0 %v4902_v35 }
 0x401   : > { %3105 = vmatmul.mubr.msk.bf16.gmra.mrb[28].mxu0 %vm525_vm0, %v3421_v38 }
 0x402   : > { %1579 = vmatprep.mubr.bf16.mxu0 %v4902_v35 }
 0x409   : > { %3106 = vmatmul.mubr.msk.bf16.gmra.mrb[32].mxu0 %vm525_vm0, %v3422_v39 }
 0x40a   : > { %1589 = vmatprep.mubr.bf16.mxu0 %v4902_v35 }
 0x411   : > { %3107 = vmatmul.mubr.msk.bf16.gmra.mrb[36].mxu0 %vm525_vm0, %v3423_v40 }
 0x412   : > { %1599 = vmatprep.mubr.bf16.mxu0 %v4902_v35 }
 0x419   : > { %3108 = vmatmul.mubr.msk.bf16.gmra.mrb[40].mxu0 %vm525_vm0, %v3424_v41 }
 0x41a   : > { %1609 = vmatprep.mubr.bf16.mxu0 %v4902_v35 }
 0x421   : > { %3109 = vmatmul.mubr.msk.bf16.gmra.mrb[44].mxu0 %vm525_vm0, %v3425_v42 }
 0x422   : > { %1619 = vmatprep.mubr.bf16.mxu0 %v4902_v35 }
 0x429   : > { %3110 = vmatmul.mubr.msk.bf16.gmra.mrb[48].mxu0 %vm525_vm0, %v3426_v43 }
 0x42a   : > { %1629 = vmatprep.mubr.bf16.mxu0 %v4902_v35 }
 0x431   : > { %3111 = vmatmul.mubr.msk.bf16.gmra.mrb[52].mxu0 %vm525_vm0, %v3427_v44 }
 0x432   : > { %1639 = vmatprep.mubr.bf16.mxu0 %v4902_v35 }
 0x439   : > { %3112 = vmatmul.mubr.msk.bf16.gmra.mrb[56].mxu0 %vm525_vm0, %v3428_v45 }
 0x43a   : > { %1649 = vmatprep.mubr.bf16.mxu0 %v4902_v35 }
 0x441   : > { %3113 = vmatmul.mubr.msk.bf16.gmra.mrb[60].mxu0 %vm525_vm0, %v3429_v46 }
 0x442   : > { %1659 = vmatprep.mubr.bf16.mxu0 %v4902_v35 }
 0x449   : > { %3114 = vmatmul.mubr.msk.bf16.gmra.mrb[64].mxu0 %vm525_vm0, %v3430_v47 }
 0x44a   : > { %1669 = vmatprep.mubr.bf16.mxu0 %v4902_v35 }
 0x451   : > { %3115 = vmatmul.mubr.msk.bf16.gmra.mrb[68].mxu0 %vm525_vm0, %v3431_v48 }
 0x4cc   : > { %v1561_v49 = vpop.f32.mrb[24].mxu0 }
 0x4cd   : > { %1680 = vst [vmem:[#allocation2] sm:$0xff] %v1561_v49  ;;  %v1563_v50 = vpop.f32.mrb[25].mxu0 }
 0x4ce   : > { %1681 = vst [vmem:[#allocation2 + $0x8] sm:$0xff] %v1563_v50  ;;  %v1565_v51 = vpop.f32.mrb[26].mxu0 }
 0x4cf   : > { %1682 = vst [vmem:[#allocation2 + $0x10] sm:$0xff] %v1565_v51  ;;  %v1567_v52 = vpop.f32.mrb[27].mxu0 }
 0x4d0   : > { %1683 = vst [vmem:[#allocation2 + $0x18] sm:$0xff] %v1567_v52 }
 0x4d4   : > { %v1571_v53 = vpop.f32.mrb[28].mxu0 }
 0x4d5   : > { %1684 = vst [vmem:[#allocation2 + $0x20] sm:$0xff] %v1571_v53  ;;  %v1573_v54 = vpop.f32.mrb[29].mxu0 }
 0x4d6   : > { %1685 = vst [vmem:[#allocation2 + $0x28] sm:$0xff] %v1573_v54  ;;  %v1575_v55 = vpop.f32.mrb[30].mxu0 }
 0x4d7   : > { %1686 = vst [vmem:[#allocation2 + $0x30] sm:$0xff] %v1575_v55  ;;  %v1577_v1 = vpop.f32.mrb[31].mxu0 }
 0x4d8   : > { %1687 = vst [vmem:[#allocation2 + $0x38] sm:$0xff] %v1577_v1 }
 0x4dc   : > { %v1581_v56 = vpop.f32.mrb[32].mxu0 }
 0x4dd   : > { %1688 = vst [vmem:[#allocation2 + $0x40] sm:$0xff] %v1581_v56  ;;  %v1583_v57 = vpop.f32.mrb[33].mxu0 }
 0x4de   : > { %1689 = vst [vmem:[#allocation2 + $0x48] sm:$0xff] %v1583_v57  ;;  %v1585_v58 = vpop.f32.mrb[34].mxu0 }
 0x4df   : > { %1690 = vst [vmem:[#allocation2 + $0x50] sm:$0xff] %v1585_v58  ;;  %v1587_v59 = vpop.f32.mrb[35].mxu0 }
 0x4e0   : > { %1691 = vst [vmem:[#allocation2 + $0x58] sm:$0xff] %v1587_v59 }
 0x4e4   : > { %v1591_v0 = vpop.f32.mrb[36].mxu0 }
 0x4e5   : > { %1692 = vst [vmem:[#allocation2 + $0x60] sm:$0xff] %v1591_v0  ;;  %v1593_v60 = vpop.f32.mrb[37].mxu0 }
 0x4e6   : > { %1693 = vst [vmem:[#allocation2 + $0x68] sm:$0xff] %v1593_v60  ;;  %v1595_v61 = vpop.f32.mrb[38].mxu0 }
 0x4e7   : > { %1694 = vst [vmem:[#allocation2 + $0x70] sm:$0xff] %v1595_v61  ;;  %v1597_v62 = vpop.f32.mrb[39].mxu0 }
 0x4e8   : > { %1695 = vst [vmem:[#allocation2 + $0x78] sm:$0xff] %v1597_v62 }
 0x4ec   : > { %v1601_v63 = vpop.f32.mrb[40].mxu0 }
 0x4ed   : > { %1696 = vst [vmem:[#allocation2 + $0x80] sm:$0xff] %v1601_v63  ;;  %v1603_v18 = vpop.f32.mrb[41].mxu0 }
 0x4ee   : > { %1697 = vst [vmem:[#allocation2 + $0x88] sm:$0xff] %v1603_v18  ;;  %v1605_v20 = vpop.f32.mrb[42].mxu0 }
 0x4ef   : > { %1698 = vst [vmem:[#allocation2 + $0x90] sm:$0xff] %v1605_v20  ;;  %v1607_v19 = vpop.f32.mrb[43].mxu0 }
 0x4f0   : > { %1699 = vst [vmem:[#allocation2 + $0x98] sm:$0xff] %v1607_v19 }
 0x4f4   : > { %v1611_v22 = vpop.f32.mrb[44].mxu0 }
 0x4f5   : > { %1700 = vst [vmem:[#allocation2 + $0xa0] sm:$0xff] %v1611_v22  ;;  %v1613_v21 = vpop.f32.mrb[45].mxu0 }
 0x4f6   : > { %1701 = vst [vmem:[#allocation2 + $0xa8] sm:$0xff] %v1613_v21  ;;  %v1615_v23 = vpop.f32.mrb[46].mxu0 }
 0x4f7   : > { %1702 = vst [vmem:[#allocation2 + $0xb0] sm:$0xff] %v1615_v23  ;;  %v1617_v24 = vpop.f32.mrb[47].mxu0 }
 0x4f8   : > { %1703 = vst [vmem:[#allocation2 + $0xb8] sm:$0xff] %v1617_v24 }
 0x4fc   : > { %v1621_v32 = vpop.f32.mrb[48].mxu0 }
 0x4fd   : > { %1704 = vst [vmem:[#allocation2 + $0xc0] sm:$0xff] %v1621_v32  ;;  %v1623_v25 = vpop.f32.mrb[49].mxu0 }
 0x4fe   : > { %1705 = vst [vmem:[#allocation2 + $0xc8] sm:$0xff] %v1623_v25  ;;  %v1625_v27 = vpop.f32.mrb[50].mxu0 }
 0x4ff   : > { %1706 = vst [vmem:[#allocation2 + $0xd0] sm:$0xff] %v1625_v27  ;;  %v1627_v26 = vpop.f32.mrb[51].mxu0 }
 0x500   : > { %1707 = vst [vmem:[#allocation2 + $0xd8] sm:$0xff] %v1627_v26 }
 0x504   : > { %v1631_v28 = vpop.f32.mrb[52].mxu0 }
 0x505   : > { %1708 = vst [vmem:[#allocation2 + $0xe0] sm:$0xff] %v1631_v28  ;;  %v1633_v29 = vpop.f32.mrb[53].mxu0 }
 0x506   : > { %1709 = vst [vmem:[#allocation2 + $0xe8] sm:$0xff] %v1633_v29  ;;  %v1635_v30 = vpop.f32.mrb[54].mxu0 }
 0x507   : > { %1710 = vst [vmem:[#allocation2 + $0xf0] sm:$0xff] %v1635_v30  ;;  %v1637_v31 = vpop.f32.mrb[55].mxu0 }
 0x508   : > { %1711 = vst [vmem:[#allocation2 + $0xf8] sm:$0xff] %v1637_v31 }
 0x50c   : > { %v1641_v33 = vpop.f32.mrb[56].mxu0 }
 0x50d   : > { %1712 = vst [vmem:[#allocation2 + $0x100] sm:$0xff] %v1641_v33  ;;  %v1643_v34 = vpop.f32.mrb[57].mxu0 }
 0x50e   : > { %1713 = vst [vmem:[#allocation2 + $0x108] sm:$0xff] %v1643_v34  ;;  %v1645_v36 = vpop.f32.mrb[58].mxu0 }
 0x50f   : > { %1714 = vst [vmem:[#allocation2 + $0x110] sm:$0xff] %v1645_v36  ;;  %v1647_v37 = vpop.f32.mrb[59].mxu0 }
 0x510   : > { %1715 = vst [vmem:[#allocation2 + $0x118] sm:$0xff] %v1647_v37 }
 0x514   : > { %v1651_v38 = vpop.f32.mrb[60].mxu0 }
 0x515   : > { %1716 = vst [vmem:[#allocation2 + $0x120] sm:$0xff] %v1651_v38  ;;  %v1653_v39 = vpop.f32.mrb[61].mxu0 }
 0x516   : > { %1717 = vst [vmem:[#allocation2 + $0x128] sm:$0xff] %v1653_v39  ;;  %v1655_v40 = vpop.f32.mrb[62].mxu0 }
 0x517   : > { %1718 = vst [vmem:[#allocation2 + $0x130] sm:$0xff] %v1655_v40  ;;  %v1657_v41 = vpop.f32.mrb[63].mxu0 }
 0x518   : > { %1719 = vst [vmem:[#allocation2 + $0x138] sm:$0xff] %v1657_v41 }
 0x51c   : > { %v1661_v42 = vpop.f32.mrb[64].mxu0 }
 0x51d   : > { %1720 = vst [vmem:[#allocation2 + $0x140] sm:$0xff] %v1661_v42  ;;  %v1663_v43 = vpop.f32.mrb[65].mxu0 }
 0x51e   : > { %1721 = vst [vmem:[#allocation2 + $0x148] sm:$0xff] %v1663_v43  ;;  %v1665_v44 = vpop.f32.mrb[66].mxu0 }
 0x51f   : > { %1722 = vst [vmem:[#allocation2 + $0x150] sm:$0xff] %v1665_v44  ;;  %v1667_v45 = vpop.f32.mrb[67].mxu0 }
 0x520   : > { %1723 = vst [vmem:[#allocation2 + $0x158] sm:$0xff] %v1667_v45 }
 0x524   : > { %v1671_v46 = vpop.f32.mrb[68].mxu0 }
 0x525   : > { %1724 = vst [vmem:[#allocation2 + $0x160] sm:$0xff] %v1671_v46  ;;  %v1673_v47 = vpop.f32.mrb[69].mxu0 }
 0x526   : > { %1725 = vst [vmem:[#allocation2 + $0x168] sm:$0xff] %v1673_v47  ;;  %v1675_v48 = vpop.f32.mrb[70].mxu0 }
 0x527   : > { %1726 = vst [vmem:[#allocation2 + $0x170] sm:$0xff] %v1675_v48  ;;  %v1677_v49 = vpop.f32.mrb[71].mxu0 }
 0x528   : > { %1727 = vst [vmem:[#allocation2 + $0x178] sm:$0xff] %v1677_v49 }
 0x529 LB: >> { %v3712_v50 = vmov 0.0   ;;  %s4171_s17 = sshll.u32 %s3708_s16, 3  ;;  %vm1822_vm4 = vcmask 64512   ;;  %s1733_s16 = sadd.s32 1, %s3708_s16   ;;  %s3708_s16 = sphi %s4164_s16, %s1733_s16  }
 0x52a   : >> { %1983 = vmatprep.mubr.f32.mxu0 %v3712_v50  ;;  %s1737_s22 = sshra.s32 %s4171_s17, 3  ;;  %s1735_s23 = sadd.s32 64, %s4171_s17 }
 0x52b   : >> { %s4175_s25 = sshll.u32 %s1737_s22, 4  ;;  %s1744_s24 = sshra.s32 %s1735_s23, 3 }
 0x52c   : >> { %s3171_s26 = sshll.u32 %s1744_s24, 4  ;;  %s1741_s27 = scalar_lea.vmem [#allocation2], %s4175_s25 }
 0x52d   : >> { %s1748_s28 = scalar_lea.vmem [#allocation2], %s3171_s26  ;;  %s1736_s29 = sadd.s32 128, %s4171_s17 }
 0x52e   : >> { %s1751_s22 = sshra.s32 %s1736_s29, 3  ;;  %s2732_s17 = scalar_lea.vmem [#allocation3], %s4175_s25 }
 0x52f   : >> { %v1742_v51 = vld [vmem:[%s1741_s27] sm:$0xff]  ;;  %v1750_v52 = vld [vmem:[%s1748_s28 + $0x8] sm:$0xff]  ;;  %s3172_s23 = sshll.u32 %s1751_s22, 4  ;;  %p1730_p11 = scmp.ge.s32.totalorder %s1733_s16, 8  }
 0x530   : >> { %1758 = vxpose.xlu0.b32.start.end [1/1] (short) %v1742_v51, 128  ;;  %v1749_v53 = vld [vmem:[%s1748_s28] sm:$0xff]  ;;  %1919 = vmatprep.subr.mxu0 %v1750_v52  ;;  %v1743_v54 = vld [vmem:[%s1741_s27 + $0x8] sm:$0xff]  ;;  %s4694_s24 = scalar_lea.vmem [#allocation2], %s3172_s23  ;;  %s3174_s28 = sshll.u32 (%p1730_p11), %s3787_s13, 11 }
 0x531   : >> { %1920 = vmatpush1.msra.mxu0 %v1749_v53  ;;  %s2966_s29 = sshll.u32 (%p1730_p11), %s4162_s14, 4  ;;  %s4837_s23 = scalar_lea.hbm (%p1730_p11), %s4901_s9, %s3174_s28  ;;  %s4839_s29 = int_to_ptr.vmem [resolvable:$true] %s2966_s29 }
 0x532   : > { %s3713_s16 = smov (%p1730_p11), [#allocation4]  }
 0x533   : > { %s3642_s25 = sshll.u32 (%p1730_p11), %s3713_s16, 4  ;;  %s3643_s25 = int_to_ptr.vmem [resolvable:$false] %s3642_s25 }
 0x534   : > { %s3644_s26 = scalar_lea.vmem (%p1730_p11), %s3643_s25, 4096  ;;  %p3645_p1 = scmp.lt.s32.totalorder (%p1730_p11), %s4839_s29, %s3643_s25 }
 0x56d   : >> { %1790 = vxpose.xlu0.b32.start.end [1/1] (short) %v1743_v54, 128 }
 0x5b0   : >> { %v1774_v55 = vpop.trf.xlu0 }
 0x5b1   : >> { %3123 = vmatmul.mubr.msk.f32.vlgmr.msra.gmra.mrb[0].mxu0 %vm1822_vm4, %v1774_v55 }
 0x5b2   : >> { %1989 = vmatprep.mubr.f32.mxu0 %v3712_v50 }
 0x5b4   : >> { %v1775_v1 = vpop.trf.xlu0 }
 0x5b5   : >> { %3124 = vmatmul.mubr.msk.f32.gmra.mrb[2].mxu0 %vm1822_vm4, %v1775_v1 }
 0x5b6   : >> { %1995 = vmatprep.mubr.f32.mxu0 %v3712_v50 }
 0x5b8   : >> { %v1776_v56 = vpop.trf.xlu0 }
 0x5b9   : >> { %3125 = vmatmul.mubr.msk.f32.gmra.mrb[4].mxu0 %vm1822_vm4, %v1776_v56 }
 0x5ba   : >> { %2001 = vmatprep.mubr.f32.mxu0 %v3712_v50 }
 0x5bc   : >> { %v1777_v57 = vpop.trf.xlu0 }
 0x5bd   : >> { %3126 = vmatmul.mubr.msk.f32.gmra.mrb[6].mxu0 %vm1822_vm4, %v1777_v57 }
 0x5be   : >> { %2007 = vmatprep.mubr.f32.mxu0 %v3712_v50 }
 0x5c0   : >> { %v1778_v58 = vpop.trf.xlu0 }
 0x5c1   : >> { %3127 = vmatmul.mubr.msk.f32.gmra.mrb[8].mxu0 %vm1822_vm4, %v1778_v58 }
 0x5c2   : >> { %2013 = vmatprep.mubr.f32.mxu0 %v3712_v50 }
 0x5c4   : >> { %v1779_v59 = vpop.trf.xlu0 }
 0x5c5   : >> { %3128 = vmatmul.mubr.msk.f32.gmra.mrb[10].mxu0 %vm1822_vm4, %v1779_v59 }
 0x5c6   : >> { %2019 = vmatprep.mubr.f32.mxu0 %v3712_v50 }
 0x5c8   : >> { %v1780_v0 = vpop.trf.xlu0 }
 0x5c9   : >> { %3129 = vmatmul.mubr.msk.f32.gmra.mrb[12].mxu0 %vm1822_vm4, %v1780_v0 }
 0x5ca   : >> { %2025 = vmatprep.mubr.f32.mxu0 %v3712_v50 }
 0x5cc   : >> { %v1781_v60 = vpop.trf.xlu0 }
 0x5cd   : >> { %3130 = vmatmul.mubr.msk.f32.gmra.mrb[14].mxu0 %vm1822_vm4, %v1781_v60 }
 0x5ce   : >> { %2031 = vmatprep.mubr.f32.mxu0 %v3712_v50 }
 0x5d0   : >> { %v1782_v61 = vpop.trf.xlu0 }
 0x5d1   : >> { %3131 = vmatmul.mubr.msk.f32.gmra.mrb[16].mxu0 %vm1822_vm4, %v1782_v61 }
 0x5d2   : >> { %2037 = vmatprep.mubr.f32.mxu0 %v3712_v50 }
 0x5d4   : >> { %v1783_v62 = vpop.trf.xlu0 }
 0x5d5   : >> { %3132 = vmatmul.mubr.msk.f32.gmra.mrb[18].mxu0 %vm1822_vm4, %v1783_v62 }
 0x5d6   : >> { %2043 = vmatprep.mubr.f32.mxu0 %v3712_v50 }
 0x5d8   : >> { %v1784_v63 = vpop.trf.xlu0 }
 0x5d9   : >> { %3133 = vmatmul.mubr.msk.f32.gmra.mrb[20].mxu0 %vm1822_vm4, %v1784_v63 }
 0x5da   : >> { %2049 = vmatprep.mubr.f32.mxu0 %v3712_v50 }
 0x5dc   : >> { %v1785_v18 = vpop.trf.xlu0 }
 0x5dd   : >> { %3134 = vmatmul.mubr.msk.f32.gmra.mrb[22].mxu0 %vm1822_vm4, %v1785_v18 }
 0x5de   : >> { %2055 = vmatprep.mubr.f32.mxu0 %v3712_v50 }
 0x5e0   : >> { %v1786_v20 = vpop.trf.xlu0 }
 0x5e1   : >> { %3135 = vmatmul.mubr.msk.f32.gmra.mrb[24].mxu0 %vm1822_vm4, %v1786_v20 }
 0x5e2   : >> { %2061 = vmatprep.mubr.f32.mxu0 %v3712_v50 }
 0x5e4   : >> { %v1787_v19 = vpop.trf.xlu0 }
 0x5e5   : >> { %3136 = vmatmul.mubr.msk.f32.gmra.mrb[26].mxu0 %vm1822_vm4, %v1787_v19 }
 0x5e6   : >> { %2067 = vmatprep.mubr.f32.mxu0 %v3712_v50 }
 0x5e8   : >> { %v1788_v22 = vpop.trf.xlu0 }
 0x5e9   : >> { %3137 = vmatmul.mubr.msk.f32.gmra.mrb[28].mxu0 %vm1822_vm4, %v1788_v22 }
 0x5ea   : >> { %2073 = vmatprep.mubr.f32.mxu0 %v3712_v50 }
 0x5ec   : >> { %v1789_v21 = vpop.trf.xlu0 }
 0x5ed   : >> { %3138 = vmatmul.mubr.msk.f32.gmra.mrb[30].mxu0 %vm1822_vm4, %v1789_v21 }
 0x5ee   : >> { %2079 = vmatprep.mubr.f32.mxu0 %v3712_v50 }
 0x5f0   : >> { %v1806_v23 = vpop.trf.xlu0 }
 0x5f1   : >> { %3139 = vmatmul.mubr.msk.f32.gmra.mrb[32].mxu0 %vm1822_vm4, %v1806_v23 }
 0x5f2   : >> { %2085 = vmatprep.mubr.f32.mxu0 %v3712_v50 }
 0x5f4   : >> { %v1807_v24 = vpop.trf.xlu0 }
 0x5f5   : >> { %3140 = vmatmul.mubr.msk.f32.gmra.mrb[34].mxu0 %vm1822_vm4, %v1807_v24 }
 0x5f6   : >> { %2091 = vmatprep.mubr.f32.mxu0 %v3712_v50 }
 0x5f8   : >> { %v1808_v32 = vpop.trf.xlu0 }
 0x5f9   : >> { %3141 = vmatmul.mubr.msk.f32.gmra.mrb[36].mxu0 %vm1822_vm4, %v1808_v32 }
 0x5fa   : >> { %2097 = vmatprep.mubr.f32.mxu0 %v3712_v50 }
 0x5fc   : >> { %v1809_v25 = vpop.trf.xlu0 }
 0x5fd   : >> { %3142 = vmatmul.mubr.msk.f32.gmra.mrb[38].mxu0 %vm1822_vm4, %v1809_v25 }
 0x5fe   : >> { %2103 = vmatprep.mubr.f32.mxu0 %v3712_v50 }
 0x600   : >> { %v1810_v27 = vpop.trf.xlu0 }
 0x601   : >> { %3143 = vmatmul.mubr.msk.f32.gmra.mrb[40].mxu0 %vm1822_vm4, %v1810_v27 }
 0x602   : >> { %2109 = vmatprep.mubr.f32.mxu0 %v3712_v50 }
 0x604   : >> { %v1811_v26 = vpop.trf.xlu0 }
 0x605   : >> { %3144 = vmatmul.mubr.msk.f32.gmra.mrb[42].mxu0 %vm1822_vm4, %v1811_v26 }
 0x606   : >> { %2115 = vmatprep.mubr.f32.mxu0 %v3712_v50 }
 0x608   : >> { %v1812_v28 = vpop.trf.xlu0 }
 0x609   : >> { %3145 = vmatmul.mubr.msk.f32.gmra.mrb[44].mxu0 %vm1822_vm4, %v1812_v28 }
 0x60a   : >> { %2121 = vmatprep.mubr.f32.mxu0 %v3712_v50 }
 0x60c   : >> { %v1813_v29 = vpop.trf.xlu0 }
 0x60d   : >> { %3146 = vmatmul.mubr.msk.f32.gmra.mrb[46].mxu0 %vm1822_vm4, %v1813_v29 }
 0x60e   : >> { %2127 = vmatprep.mubr.f32.mxu0 %v3712_v50 }
 0x610   : >> { %v1814_v30 = vpop.trf.xlu0 }
 0x611   : >> { %3147 = vmatmul.mubr.msk.f32.gmra.mrb[48].mxu0 %vm1822_vm4, %v1814_v30 }
 0x612   : >> { %2133 = vmatprep.mubr.f32.mxu0 %v3712_v50 }
 0x614   : >> { %v1815_v31 = vpop.trf.xlu0 }
 0x615   : >> { %3148 = vmatmul.mubr.msk.f32.gmra.mrb[50].mxu0 %vm1822_vm4, %v1815_v31 }
 0x616   : >> { %2139 = vmatprep.mubr.f32.mxu0 %v3712_v50 }
 0x618   : >> { %v1816_v33 = vpop.trf.xlu0 }
 0x619   : >> { %3149 = vmatmul.mubr.msk.f32.gmra.mrb[52].mxu0 %vm1822_vm4, %v1816_v33 }
 0x61a   : >> { %2145 = vmatprep.mubr.f32.mxu0 %v3712_v50 }
 0x61c   : >> { %v1817_v34 = vpop.trf.xlu0 }
 0x61d   : >> { %3150 = vmatmul.mubr.msk.f32.gmra.mrb[54].mxu0 %vm1822_vm4, %v1817_v34 }
 0x61e   : >> { %2151 = vmatprep.mubr.f32.mxu0 %v3712_v50 }
 0x620   : >> { %v1818_v36 = vpop.trf.xlu0 }
 0x621   : >> { %3151 = vmatmul.mubr.msk.f32.gmra.mrb[56].mxu0 %vm1822_vm4, %v1818_v36 }
 0x622   : >> { %2157 = vmatprep.mubr.f32.mxu0 %v3712_v50 }
 0x624   : >> { %v1819_v37 = vpop.trf.xlu0 }
 0x625   : >> { %3152 = vmatmul.mubr.msk.f32.gmra.mrb[58].mxu0 %vm1822_vm4, %v1819_v37 }
 0x626   : >> { %2163 = vmatprep.mubr.f32.mxu0 %v3712_v50 }
 0x628   : >> { %v1820_v38 = vpop.trf.xlu0 }
 0x629   : >> { %3153 = vmatmul.mubr.msk.f32.gmra.mrb[60].mxu0 %vm1822_vm4, %v1820_v38 }
 0x62a   : >> { %2169 = vmatprep.mubr.f32.mxu0 %v3712_v50 }
 0x62c   : >> { %v1821_v39 = vpop.trf.xlu0 }
 0x62d   : >> { %3154 = vmatmul.mubr.msk.f32.gmra.mrb[62].mxu0 %vm1822_vm4, %v1821_v39 }
 0x684   : >> { %v4241_v40 = vpop.f32.mrb[0].mxu0 }
 0x685   : >> { %v4243_v41 = vpop.f32.mrb[1].mxu0 }
 0x686   : >> { %v2176_v42 = vmax.f32 %v4241_v40, %v4243_v41 }
 0x688   : >> { %2177 = vmax.xlane.f32.xlu1 %v2176_v42  ;;  %v4247_v43 = vpop.f32.mrb[2].mxu0 }
 0x689   : >> { %v4249_v44 = vpop.f32.mrb[3].mxu0 }
 0x68a   : >> { %v2179_v45 = vmax.f32 %v4247_v43, %v4249_v44 }
 0x68c   : >> { %2180 = vmax.xlane.f32.xlu1 %v2179_v45  ;;  %v4253_v46 = vpop.f32.mrb[4].mxu0 }
 0x68d   : >> { %v4255_v47 = vpop.f32.mrb[5].mxu0 }
 0x68e   : >> { %v2182_v48 = vmax.f32 %v4253_v46, %v4255_v47 }
 0x690   : >> { %2183 = vmax.xlane.f32.xlu1 %v2182_v48  ;;  %v4259_v49 = vpop.f32.mrb[6].mxu0 }
 0x691   : >> { %v4261_v50 = vpop.f32.mrb[7].mxu0 }
 0x692   : >> { %v2185_v51 = vmax.f32 %v4259_v49, %v4261_v50 }
 0x694   : >> { %2186 = vmax.xlane.f32.xlu1 %v2185_v51  ;;  %v4265_v52 = vpop.f32.mrb[8].mxu0 }
 0x695   : >> { %v4267_v53 = vpop.f32.mrb[9].mxu0 }
 0x696   : >> { %v2188_v54 = vmax.f32 %v4265_v52, %v4267_v53 }
 0x698   : >> { %2189 = vmax.xlane.f32.xlu1 %v2188_v54  ;;  %v4271_v55 = vpop.f32.mrb[10].mxu0 }
 0x699   : >> { %v4273_v1 = vpop.f32.mrb[11].mxu0 }
 0x69a   : >> { %v2191_v56 = vmax.f32 %v4271_v55, %v4273_v1 }
 0x69c   : >> { %2192 = vmax.xlane.f32.xlu1 %v2191_v56  ;;  %v4277_v57 = vpop.f32.mrb[12].mxu0 }
 0x69d   : >> { %v4279_v58 = vpop.f32.mrb[13].mxu0 }
 0x69e   : >> { %v2194_v59 = vmax.f32 %v4277_v57, %v4279_v58 }
 0x6a0   : >> { %2195 = vmax.xlane.f32.xlu1 %v2194_v59  ;;  %v4283_v0 = vpop.f32.mrb[14].mxu0 }
 0x6a1   : >> { %v4285_v60 = vpop.f32.mrb[15].mxu0 }
 0x6a2   : >> { %v2197_v61 = vmax.f32 %v4283_v0, %v4285_v60 }
 0x6a4   : >> { %2198 = vmax.xlane.f32.xlu1 %v2197_v61  ;;  %v4289_v62 = vpop.f32.mrb[16].mxu0 }
 0x6a5   : >> { %v4291_v63 = vpop.f32.mrb[17].mxu0 }
 0x6a6   : >> { %v2200_v18 = vmax.f32 %v4289_v62, %v4291_v63 }
 0x6a8   : >> { %2201 = vmax.xlane.f32.xlu1 %v2200_v18  ;;  %v4295_v20 = vpop.f32.mrb[18].mxu0 }
 0x6a9   : >> { %v4297_v19 = vpop.f32.mrb[19].mxu0 }
 0x6aa   : >> { %v2203_v22 = vmax.f32 %v4295_v20, %v4297_v19 }
 0x6ac   : >> { %2204 = vmax.xlane.f32.xlu1 %v2203_v22  ;;  %v4301_v21 = vpop.f32.mrb[20].mxu0 }
 0x6ad   : >> { %v4303_v23 = vpop.f32.mrb[21].mxu0 }
 0x6ae   : >> { %v2206_v24 = vmax.f32 %v4301_v21, %v4303_v23 }
 0x6b0   : >> { %2207 = vmax.xlane.f32.xlu1 %v2206_v24  ;;  %v4307_v32 = vpop.f32.mrb[22].mxu0 }
 0x6b1   : >> { %v4309_v25 = vpop.f32.mrb[23].mxu0 }
 0x6b2   : >> { %v2209_v27 = vmax.f32 %v4307_v32, %v4309_v25 }
 0x6b4   : >> { %2210 = vmax.xlane.f32.xlu1 %v2209_v27  ;;  %v4313_v26 = vpop.f32.mrb[24].mxu0 }
 0x6b5   : >> { %v4315_v28 = vpop.f32.mrb[25].mxu0 }
 0x6b6   : >> { %v2212_v29 = vmax.f32 %v4313_v26, %v4315_v28 }
 0x6b8   : >> { %2213 = vmax.xlane.f32.xlu1 %v2212_v29  ;;  %v4319_v30 = vpop.f32.mrb[26].mxu0 }
 0x6b9   : >> { %v4321_v31 = vpop.f32.mrb[27].mxu0 }
 0x6ba   : >> { %v2215_v33 = vmax.f32 %v4319_v30, %v4321_v31 }
 0x6bc   : >> { %2216 = vmax.xlane.f32.xlu1 %v2215_v33  ;;  %v4325_v34 = vpop.f32.mrb[28].mxu0 }
 0x6bd   : >> { %v4327_v36 = vpop.f32.mrb[29].mxu0 }
 0x6be   : >> { %v2218_v37 = vmax.f32 %v4325_v34, %v4327_v36 }
 0x6c0   : >> { %2219 = vmax.xlane.f32.xlu1 %v2218_v37  ;;  %v4331_v38 = vpop.f32.mrb[30].mxu0 }
 0x6c1   : >> { %v4333_v39 = vpop.f32.mrb[31].mxu0 }
 0x6c2   : >> { %v2221_v42 = vmax.f32 %v4331_v38, %v4333_v39 }
 0x6c4   : >> { %2222 = vmax.xlane.f32.xlu1 %v2221_v42  ;;  %v4337_v45 = vpop.f32.mrb[32].mxu0 }
 0x6c5   : >> { %v4339_v48 = vpop.f32.mrb[33].mxu0 }
 0x6c6   : >> { %v2224_v51 = vmax.f32 %v4337_v45, %v4339_v48 }
 0x6c8   : >> { %2225 = vmax.xlane.f32.xlu1 %v2224_v51  ;;  %v4343_v54 = vpop.f32.mrb[34].mxu0 }
 0x6c9   : >> { %v4345_v56 = vpop.f32.mrb[35].mxu0 }
 0x6ca   : >> { %v2227_v59 = vmax.f32 %v4343_v54, %v4345_v56 }
 0x6cc   : >> { %2228 = vmax.xlane.f32.xlu0 %v2227_v59  ;;  %v4349_v61 = vpop.f32.mrb[36].mxu0 }
 0x6cd   : >> { %v4351_v18 = vpop.f32.mrb[37].mxu0 }
 0x6ce   : >> { %v2230_v22 = vmax.f32 %v4349_v61, %v4351_v18 }
 0x6d0   : >> { %2231 = vmax.xlane.f32.xlu1 %v2230_v22  ;;  %v4355_v24 = vpop.f32.mrb[38].mxu0 }
 0x6d1   : >> { %v4357_v27 = vpop.f32.mrb[39].mxu0 }
 0x6d2   : >> { %v2233_v29 = vmax.f32 %v4355_v24, %v4357_v27 }
 0x6d4   : >> { %2234 = vmax.xlane.f32.xlu1 %v2233_v29  ;;  %v4361_v33 = vpop.f32.mrb[40].mxu0 }
 0x6d5   : >> { %v4363_v37 = vpop.f32.mrb[41].mxu0 }
 0x6d6   : >> { %v2236_v42 = vmax.f32 %v4361_v33, %v4363_v37 }
 0x6d8   : >> { %2237 = vmax.xlane.f32.xlu1 %v2236_v42  ;;  %v4367_v51 = vpop.f32.mrb[42].mxu0 }
 0x6d9   : >> { %v4369_v59 = vpop.f32.mrb[43].mxu0 }
 0x6da   : >> { %v2239_v22 = vmax.f32 %v4367_v51, %v4369_v59 }
 0x6dc   : >> { %2240 = vmax.xlane.f32.xlu1 %v2239_v22  ;;  %v4373_v35 = vpop.f32.mrb[44].mxu0 }
 0x6dd   : >> { %v4375_v16 = vpop.f32.mrb[45].mxu0 }
 0x6de   : >> { %v2242_v29 = vmax.f32 %v4373_v35, %v4375_v16 }
 0x6e0   : >> { %2243 = vmax.xlane.f32.xlu1 %v2242_v29  ;;  %v4379_v3 = vpop.f32.mrb[46].mxu0 }
 0x6e1   : >> { %v4381_v17 = vpop.f32.mrb[47].mxu0 }
 0x6e2   : >> { %v2245_v42 = vmax.f32 %v4379_v3, %v4381_v17 }
 0x6e4   : >> { %2246 = vmax.xlane.f32.xlu1 %v2245_v42  ;;  %v4385_v5 = vpop.f32.mrb[48].mxu0 }
 0x6e5   : >> { %v4387_v14 = vpop.f32.mrb[49].mxu0 }
 0x6e6   : >> { %v2248_v22 = vmax.f32 %v4385_v5, %v4387_v14 }
 0x6e8   : >> { %2249 = vmax.xlane.f32.xlu1 %v2248_v22  ;;  %v4391_v11 = vpop.f32.mrb[50].mxu0 }
 0x6e9   : >> { %4964 = vst [vmem:[#allocation23_spill] sm:$0xff] %v4391_v11  ;;  %v4393_v15 = vpop.f32.mrb[51].mxu0 }
 0x6ea   : >> { %4965 = vst [vmem:[#allocation24_spill] sm:$0xff] %v4393_v15  ;;  %v2251_v29 = vmax.f32 %v4391_v11, %v4393_v15 }
 0x6ec   : >> { %2252 = vmax.xlane.f32.xlu1 %v2251_v29  ;;  %v4397_v13 = vpop.f32.mrb[52].mxu0 }
 0x6ed   : >> { %4966 = vst [vmem:[#allocation25_spill] sm:$0xff] %v4397_v13  ;;  %v4399_v10 = vpop.f32.mrb[53].mxu0 }
 0x6ee   : >> { %4967 = vst [vmem:[#allocation26_spill] sm:$0xff] %v4399_v10  ;;  %v2254_v42 = vmax.f32 %v4397_v13, %v4399_v10 }
 0x6f0   : >> { %2255 = vmax.xlane.f32.xlu1 %v2254_v42  ;;  %v4403_v6 = vpop.f32.mrb[54].mxu0 }
 0x6f1   : >> { %4968 = vst [vmem:[#allocation27_spill] sm:$0xff] %v4403_v6  ;;  %v4405_v12 = vpop.f32.mrb[55].mxu0 }
 0x6f2   : >> { %4969 = vst [vmem:[#allocation28_spill] sm:$0xff] %v4405_v12  ;;  %v2257_v22 = vmax.f32 %v4403_v6, %v4405_v12 }
 0x6f4   : >> { %2258 = vmax.xlane.f32.xlu1 %v2257_v22  ;;  %v4409_v8 = vpop.f32.mrb[56].mxu0 }
 0x6f5   : >> { %4970 = vst [vmem:[#allocation29_spill] sm:$0xff] %v4409_v8  ;;  %v4411_v7 = vpop.f32.mrb[57].mxu0 }
 0x6f6   : >> { %4971 = vst [vmem:[#allocation30_spill] sm:$0xff] %v4411_v7  ;;  %v2260_v29 = vmax.f32 %v4409_v8, %v4411_v7 }
 0x6f8   : >> { %2261 = vmax.xlane.f32.xlu1 %v2260_v29  ;;  %v4415_v2 = vpop.f32.mrb[58].mxu0 }
 0x6f9   : >> { %4972 = vst [vmem:[#allocation31_spill] sm:$0xff] %v4415_v2  ;;  %v4417_v9 = vpop.f32.mrb[59].mxu0 }
 0x6fa   : >> { %4973 = vst [vmem:[#allocation32_spill] sm:$0xff] %v4417_v9  ;;  %v2263_v42 = vmax.f32 %v4415_v2, %v4417_v9 }
 0x6fc   : >> { %2264 = vmax.xlane.f32.xlu1 %v2263_v42  ;;  %v4421_v4 = vpop.f32.mrb[60].mxu0 }
 0x6fd   : >> { %4974 = vst [vmem:[#allocation33_spill] sm:$0xff] %v4421_v4  ;;  %v4423_v12 = vpop.f32.mrb[61].mxu0 }
 0x6fe   : >> { %4975 = vst [vmem:[#allocation34_spill] sm:$0xff] %v4423_v12  ;;  %v2266_v22 = vmax.f32 %v4421_v4, %v4423_v12 }
 0x700   : >> { %2267 = vmax.xlane.f32.xlu1 %v2266_v22  ;;  %v4427_v6 = vpop.f32.mrb[62].mxu0 }
 0x701   : >> { %v4429_v7 = vpop.f32.mrb[63].mxu0 }
 0x702   : >> { %4976 = vst [vmem:[#allocation35_spill] sm:$0xff] %v4429_v7  ;;  %v2269_v29 = vmax.f32 %v4427_v6, %v4429_v7 }
 0x704   : >> { %2270 = vmax.xlane.f32.xlu1 %v2269_v29 }
 0x715   : >> { %v2178_v8 = vpop.xlane.xlu1 %2177 }
 0x716   : >> { %v2272_v9 = vsub.f32 %v4241_v40, %v2178_v8  ;;  %v2273_v42 = vsub.f32 %v4243_v41, %v2178_v8 }
 0x718   : >> { %v2336_v2 = vmul.f32 1.442695, %v2272_v9  ;;  %v2338_v10 = vmul.f32 1.442695, %v2273_v42 }
 0x719   : >> { %v2181_v13 = vpop.xlane.xlu1 %2180 }
 0x71a   : >> { %3440 = vpow2.f32 %v2336_v2  ;;  %v2274_v12 = vsub.f32 %v4247_v43, %v2181_v13  ;;  %v2275_v22 = vsub.f32 %v4249_v44, %v2181_v13 }
 0x71b   : >> { %3442 = vpow2.f32 %v2338_v10 }
 0x71c   : >> { %v2340_v4 = vmul.f32 1.442695, %v2274_v12  ;;  %v2342_v15 = vmul.f32 1.442695, %v2275_v22 }
 0x71d   : >> { %v2184_v11 = vpop.xlane.xlu1 %2183 }
 0x71e   : >> { %3444 = vpow2.f32 %v2340_v4  ;;  %v2276_v29 = vsub.f32 %v4253_v46, %v2184_v11  ;;  %v2277_v7 = vsub.f32 %v4255_v47, %v2184_v11 }
 0x71f   : >> { %3446 = vpow2.f32 %v2342_v15 }
 0x720   : >> { %v2344_v40 = vmul.f32 1.442695, %v2276_v29  ;;  %v2346_v8 = vmul.f32 1.442695, %v2277_v7 }
 0x721   : >> { %v2187_v9 = vpop.xlane.xlu1 %2186 }
 0x722   : >> { %3448 = vpow2.f32 %v2344_v40  ;;  %v2278_v2 = vsub.f32 %v4259_v49, %v2187_v9  ;;  %v2279_v41 = vsub.f32 %v4261_v50, %v2187_v9 }
 0x723   : >> { %3450 = vpow2.f32 %v2346_v8 }
 0x724   : >> { %v4441_v13 = vpop.eup %3440  ;;  %v2348_v10 = vmul.f32 1.442695, %v2278_v2  ;;  %v2350_v12 = vmul.f32 1.442695, %v2279_v41 }
 0x725   : >> { %v4443_v43 = vpop.eup %3442  ;;  %v2190_v4 = vpop.xlane.xlu1 %2189 }
 0x726   : >> { %3452 = vpow2.f32 %v2348_v10  ;;  %v2280_v11 = vsub.f32 %v4265_v52, %v2190_v4  ;;  %v2281_v15 = vsub.f32 %v4267_v53, %v2190_v4  ;;  %v2464_v7 = vadd.f32 %v4443_v43, %v4441_v13 }
 0x727   : >> { %3454 = vpow2.f32 %v2350_v12 }
 0x728   : >> { %v4449_v44 = vpop.eup %3444  ;;  %v2352_v46 = vmul.f32 1.442695, %v2280_v11  ;;  %v2354_v47 = vmul.f32 1.442695, %v2281_v15  ;;  %2465 = vadd.xlane.f32.xlu1 %v2464_v7 }
 0x729   : >> { %v4451_v49 = vpop.eup %3446  ;;  %v2193_v50 = vpop.xlane.xlu1 %2192 }
 0x72a   : >> { %3456 = vpow2.f32 %v2352_v46  ;;  %v2282_v42 = vsub.f32 %v4271_v55, %v2193_v50  ;;  %v2283_v22 = vsub.f32 %v4273_v1, %v2193_v50  ;;  %v2467_v52 = vadd.f32 %v4451_v49, %v4449_v44 }
 0x72b   : >> { %3458 = vpow2.f32 %v2354_v47 }
 0x72c   : >> { %v4457_v53 = vpop.eup %3448  ;;  %v2356_v29 = vmul.f32 1.442695, %v2282_v42  ;;  %v2358_v40 = vmul.f32 1.442695, %v2283_v22  ;;  %2468 = vadd.xlane.f32.xlu1 %v2467_v52 }
 0x72d   : >> { %v4459_v8 = vpop.eup %3450  ;;  %v2196_v9 = vpop.xlane.xlu1 %2195 }
 0x72e   : >> { %3460 = vpow2.f32 %v2356_v29  ;;  %v2284_v2 = vsub.f32 %v4277_v57, %v2196_v9  ;;  %v2285_v41 = vsub.f32 %v4279_v58, %v2196_v9  ;;  %v2470_v55 = vadd.f32 %v4459_v8, %v4457_v53 }
 0x72f   : >> { %3462 = vpow2.f32 %v2358_v40 }
 0x730   : >> { %v4465_v1 = vpop.eup %3452  ;;  %v2360_v10 = vmul.f32 1.442695, %v2284_v2  ;;  %v2362_v12 = vmul.f32 1.442695, %v2285_v41  ;;  %2471 = vadd.xlane.f32.xlu1 %v2470_v55 }
 0x731   : >> { %v4467_v4 = vpop.eup %3454  ;;  %v2199_v11 = vpop.xlane.xlu1 %2198 }
 0x732   : >> { %3464 = vpow2.f32 %v2360_v10  ;;  %v2286_v15 = vsub.f32 %v4283_v0, %v2199_v11  ;;  %v2287_v7 = vsub.f32 %v4285_v60, %v2199_v11  ;;  %v2473_v57 = vadd.f32 %v4467_v4, %v4465_v1 }
 0x733   : >> { %3466 = vpow2.f32 %v2362_v12 }
 0x734   : >> { %v4473_v58 = vpop.eup %3456  ;;  %v2364_v46 = vmul.f32 1.442695, %v2286_v15  ;;  %v2366_v47 = vmul.f32 1.442695, %v2287_v7  ;;  %2474 = vadd.xlane.f32.xlu1 %v2473_v57 }
 0x735   : >> { %v4475_v50 = vpop.eup %3458  ;;  %v2202_v42 = vpop.xlane.xlu1 %2201 }
 0x736   : >> { %3468 = vpow2.f32 %v2364_v46  ;;  %v2288_v22 = vsub.f32 %v4289_v62, %v2202_v42  ;;  %v2289_v52 = vsub.f32 %v4291_v63, %v2202_v42  ;;  %v2476_v0 = vadd.f32 %v4475_v50, %v4473_v58 }
 0x737   : >> { %3470 = vpow2.f32 %v2366_v47 }
 0x738   : >> { %v4481_v60 = vpop.eup %3460  ;;  %v2368_v29 = vmul.f32 1.442695, %v2288_v22  ;;  %v2370_v40 = vmul.f32 1.442695, %v2289_v52  ;;  %2477 = vadd.xlane.f32.xlu1 %v2476_v0 }
 0x739   : >> { %v4483_v9 = vpop.eup %3462  ;;  %v2205_v2 = vpop.xlane.xlu1 %2204 }
 0x73a   : >> { %3472 = vpow2.f32 %v2368_v29  ;;  %v2290_v41 = vsub.f32 %v4295_v20, %v2205_v2  ;;  %v2291_v55 = vsub.f32 %v4297_v19, %v2205_v2  ;;  %v2479_v62 = vadd.f32 %v4483_v9, %v4481_v60 }
 0x73b   : >> { %3474 = vpow2.f32 %v2370_v40 }
 0x73c   : >> { %v4489_v63 = vpop.eup %3464  ;;  %v2372_v10 = vmul.f32 1.442695, %v2290_v41  ;;  %v2374_v12 = vmul.f32 1.442695, %v2291_v55  ;;  %2480 = vadd.xlane.f32.xlu1 %v2479_v62 }
 0x73d   : >> { %v4491_v11 = vpop.eup %3466  ;;  %v2208_v15 = vpop.xlane.xlu1 %2207 }
 0x73e   : >> { %3476 = vpow2.f32 %v2372_v10  ;;  %v2292_v7 = vsub.f32 %v4301_v21, %v2208_v15  ;;  %v2293_v57 = vsub.f32 %v4303_v23, %v2208_v15  ;;  %v2482_v20 = vadd.f32 %v4491_v11, %v4489_v63 }
 0x73f   : >> { %3478 = vpow2.f32 %v2374_v12 }
 0x740   : >> { %v4497_v19 = vpop.eup %3468  ;;  %v2376_v46 = vmul.f32 1.442695, %v2292_v7  ;;  %v2378_v47 = vmul.f32 1.442695, %v2293_v57  ;;  %2483 = vadd.xlane.f32.xlu1 %v2482_v20 }
 0x741   : >> { %v4499_v42 = vpop.eup %3470  ;;  %v2211_v22 = vpop.xlane.xlu1 %2210 }
 0x742   : >> { %3480 = vpow2.f32 %v2376_v46  ;;  %v2294_v52 = vsub.f32 %v4307_v32, %v2211_v22  ;;  %v2295_v0 = vsub.f32 %v4309_v25, %v2211_v22  ;;  %v2485_v21 = vadd.f32 %v4499_v42, %v4497_v19 }
 0x743   : >> { %3482 = vpow2.f32 %v2378_v47 }
 0x744   : >> { %v4505_v23 = vpop.eup %3472  ;;  %v2380_v29 = vmul.f32 1.442695, %v2294_v52  ;;  %v2382_v40 = vmul.f32 1.442695, %v2295_v0  ;;  %2486 = vadd.xlane.f32.xlu1 %v2485_v21 }
 0x745   : >> { %v4507_v2 = vpop.eup %3474  ;;  %v2214_v41 = vpop.xlane.xlu1 %2213 }
 0x746   : >> { %3484 = vpow2.f32 %v2380_v29  ;;  %v2296_v55 = vsub.f32 %v4313_v26, %v2214_v41  ;;  %v2297_v62 = vsub.f32 %v4315_v28, %v2214_v41  ;;  %v2488_v32 = vadd.f32 %v4507_v2, %v4505_v23 }
 0x747   : >> { %3486 = vpow2.f32 %v2382_v40 }
 0x748   : >> { %v4513_v25 = vpop.eup %3476  ;;  %v2384_v10 = vmul.f32 1.442695, %v2296_v55  ;;  %v2386_v12 = vmul.f32 1.442695, %v2297_v62  ;;  %2489 = vadd.xlane.f32.xlu1 %v2488_v32 }
 0x749   : >> { %v4515_v15 = vpop.eup %3478  ;;  %v2217_v7 = vpop.xlane.xlu1 %2216 }
 0x74a   : >> { %3488 = vpow2.f32 %v2384_v10  ;;  %v2298_v57 = vsub.f32 %v4319_v30, %v2217_v7  ;;  %v2299_v20 = vsub.f32 %v4321_v31, %v2217_v7  ;;  %v2491_v26 = vadd.f32 %v4515_v15, %v4513_v25 }
 0x74b   : >> { %3490 = vpow2.f32 %v2386_v12 }
 0x74c   : >> { %v4521_v28 = vpop.eup %3480  ;;  %v2388_v46 = vmul.f32 1.442695, %v2298_v57  ;;  %v2390_v47 = vmul.f32 1.442695, %v2299_v20  ;;  %2492 = vadd.xlane.f32.xlu1 %v2491_v26 }
 0x74d   : >> { %v4523_v22 = vpop.eup %3482  ;;  %v2220_v52 = vpop.xlane.xlu1 %2219 }
 0x74e   : >> { %3492 = vpow2.f32 %v2388_v46  ;;  %v2300_v0 = vsub.f32 %v4325_v34, %v2220_v52  ;;  %v2301_v21 = vsub.f32 %v4327_v36, %v2220_v52  ;;  %v2494_v30 = vadd.f32 %v4523_v22, %v4521_v28 }
 0x74f   : >> { %3494 = vpow2.f32 %v2390_v47 }
 0x750   : >> { %v4529_v31 = vpop.eup %3484  ;;  %v2392_v29 = vmul.f32 1.442695, %v2300_v0  ;;  %v2394_v40 = vmul.f32 1.442695, %v2301_v21  ;;  %2495 = vadd.xlane.f32.xlu1 %v2494_v30 }
 0x751   : >> { %v4531_v41 = vpop.eup %3486  ;;  %v2223_v55 = vpop.xlane.xlu1 %2222 }
 0x752   : >> { %3496 = vpow2.f32 %v2392_v29  ;;  %v2302_v62 = vsub.f32 %v4331_v38, %v2223_v55  ;;  %v2303_v32 = vsub.f32 %v4333_v39, %v2223_v55  ;;  %v2497_v34 = vadd.f32 %v4531_v41, %v4529_v31 }
 0x753   : >> { %3498 = vpow2.f32 %v2394_v40 }
 0x754   : >> { %v4537_v36 = vpop.eup %3488  ;;  %v2396_v10 = vmul.f32 1.442695, %v2302_v62  ;;  %v2398_v12 = vmul.f32 1.442695, %v2303_v32  ;;  %2498 = vadd.xlane.f32.xlu1 %v2497_v34 }
 0x755   : >> { %v4539_v7 = vpop.eup %3490  ;;  %v2226_v57 = vpop.xlane.xlu1 %2225 }
 0x756   : >> { %3500 = vpow2.f32 %v2396_v10  ;;  %v2304_v20 = vsub.f32 %v4337_v45, %v2226_v57  ;;  %v2305_v26 = vsub.f32 %v4339_v48, %v2226_v57  ;;  %v2500_v38 = vadd.f32 %v4539_v7, %v4537_v36 }
 0x757   : >> { %3502 = vpow2.f32 %v2398_v12 }
 0x758   : >> { %v4545_v39 = vpop.eup %3492  ;;  %v2400_v46 = vmul.f32 1.442695, %v2304_v20  ;;  %v2402_v47 = vmul.f32 1.442695, %v2305_v26  ;;  %2501 = vadd.xlane.f32.xlu0 %v2500_v38 }
 0x759   : >> { %v4547_v52 = vpop.eup %3494  ;;  %v2229_v0 = vpop.xlane.xlu0 %2228 }
 0x75a   : >> { %3504 = vpow2.f32 %v2400_v46  ;;  %v2306_v21 = vsub.f32 %v4343_v54, %v2229_v0  ;;  %v2307_v30 = vsub.f32 %v4345_v56, %v2229_v0  ;;  %v2503_v45 = vadd.f32 %v4547_v52, %v4545_v39 }
 0x75b   : >> { %3506 = vpow2.f32 %v2402_v47 }
 0x75c   : >> { %v4553_v48 = vpop.eup %3496  ;;  %v2404_v29 = vmul.f32 1.442695, %v2306_v21  ;;  %v2406_v40 = vmul.f32 1.442695, %v2307_v30  ;;  %2504 = vadd.xlane.f32.xlu1 %v2503_v45 }
 0x75d   : >> { %v4555_v55 = vpop.eup %3498  ;;  %v2232_v62 = vpop.xlane.xlu1 %2231 }
 0x75e   : >> { %3508 = vpow2.f32 %v2404_v29  ;;  %v2308_v32 = vsub.f32 %v4349_v61, %v2232_v62  ;;  %v2309_v34 = vsub.f32 %v4351_v18, %v2232_v62  ;;  %v2506_v54 = vadd.f32 %v4555_v55, %v4553_v48 }
 0x75f   : >> { %3510 = vpow2.f32 %v2406_v40 }
 0x760   : >> { %v4561_v56 = vpop.eup %3500  ;;  %v2408_v10 = vmul.f32 1.442695, %v2308_v32  ;;  %v2410_v12 = vmul.f32 1.442695, %v2309_v34  ;;  %2507 = vadd.xlane.f32.xlu0 %v2506_v54 }
 0x761   : >> { %v4563_v57 = vpop.eup %3502  ;;  %v2235_v20 = vpop.xlane.xlu1 %2234 }
 0x762   : >> { %3512 = vpow2.f32 %v2408_v10  ;;  %v2310_v26 = vsub.f32 %v4355_v24, %v2235_v20  ;;  %v2311_v38 = vsub.f32 %v4357_v27, %v2235_v20  ;;  %v2509_v61 = vadd.f32 %v4563_v57, %v4561_v56 }
 0x763   : >> { %3514 = vpow2.f32 %v2410_v12 }
 0x764   : >> { %v4569_v18 = vpop.eup %3504  ;;  %v2412_v46 = vmul.f32 1.442695, %v2310_v26  ;;  %v2414_v47 = vmul.f32 1.442695, %v2311_v38  ;;  %2510 = vadd.xlane.f32.xlu1 %v2509_v61 }
 0x765   : >> { %v4571_v0 = vpop.eup %3506  ;;  %v2238_v21 = vpop.xlane.xlu1 %2237 }
 0x766   : >> { %3516 = vpow2.f32 %v2412_v46  ;;  %v2312_v30 = vsub.f32 %v4361_v33, %v2238_v21  ;;  %v2313_v45 = vsub.f32 %v4363_v37, %v2238_v21  ;;  %v2512_v24 = vadd.f32 %v4571_v0, %v4569_v18 }
 0x767   : >> { %3518 = vpow2.f32 %v2414_v47 }
 0x768   : >> { %v4577_v27 = vpop.eup %3508  ;;  %v2416_v29 = vmul.f32 1.442695, %v2312_v30  ;;  %v2418_v40 = vmul.f32 1.442695, %v2313_v45  ;;  %2513 = vadd.xlane.f32.xlu0 %v2512_v24 }
 0x769   : >> { %v4579_v62 = vpop.eup %3510  ;;  %v2241_v32 = vpop.xlane.xlu1 %2240 }
 0x76a   : >> { %3520 = vpow2.f32 %v2416_v29  ;;  %v2314_v34 = vsub.f32 %v4367_v51, %v2241_v32  ;;  %v2315_v54 = vsub.f32 %v4369_v59, %v2241_v32  ;;  %v2515_v33 = vadd.f32 %v4579_v62, %v4577_v27 }
 0x76b   : >> { %3522 = vpow2.f32 %v2418_v40 }
 0x76c   : >> { %v4585_v37 = vpop.eup %3512  ;;  %v2420_v10 = vmul.f32 1.442695, %v2314_v34  ;;  %v2422_v12 = vmul.f32 1.442695, %v2315_v54  ;;  %2516 = vadd.xlane.f32.xlu1 %v2515_v33 }
 0x76d   : >> { %v4587_v20 = vpop.eup %3514  ;;  %v2244_v26 = vpop.xlane.xlu1 %2243 }
 0x76e   : >> { %3524 = vpow2.f32 %v2420_v10  ;;  %v2316_v38 = vsub.f32 %v4373_v35, %v2244_v26  ;;  %v2317_v61 = vsub.f32 %v4375_v16, %v2244_v26  ;;  %v2518_v51 = vadd.f32 %v4587_v20, %v4585_v37 }
 0x76f   : >> { %3526 = vpow2.f32 %v2422_v12 }
 0x770   : >> { %v4593_v59 = vpop.eup %3516  ;;  %v2424_v46 = vmul.f32 1.442695, %v2316_v38  ;;  %v2426_v47 = vmul.f32 1.442695, %v2317_v61  ;;  %2519 = vadd.xlane.f32.xlu0 %v2518_v51  ;;  %v4977_v61 = vld [vmem:[#allocation23_spill] sm:$0xff] }
 0x771   : >> { %v4595_v21 = vpop.eup %3518  ;;  %v2247_v30 = vpop.xlane.xlu1 %2246 }
 0x772   : >> { %3528 = vpow2.f32 %v2424_v46  ;;  %v2318_v45 = vsub.f32 %v4379_v3, %v2247_v30  ;;  %v2319_v24 = vsub.f32 %v4381_v17, %v2247_v30  ;;  %v2521_v16 = vadd.f32 %v4595_v21, %v4593_v59  ;;  %v4978_v46 = vld [vmem:[#allocation24_spill] sm:$0xff] }
 0x773   : >> { %3530 = vpow2.f32 %v2426_v47 }
 0x774   : >> { %v4601_v35 = vpop.eup %3520  ;;  %v2428_v29 = vmul.f32 1.442695, %v2318_v45  ;;  %v2430_v40 = vmul.f32 1.442695, %v2319_v24  ;;  %2522 = vadd.xlane.f32.xlu1 %v2521_v16 }
 0x775   : >> { %v4603_v32 = vpop.eup %3522  ;;  %v2250_v34 = vpop.xlane.xlu1 %2249 }
 0x776   : >> { %3532 = vpow2.f32 %v2428_v29  ;;  %v2320_v54 = vsub.f32 %v4385_v5, %v2250_v34  ;;  %v2321_v33 = vsub.f32 %v4387_v14, %v2250_v34  ;;  %v2524_v3 = vadd.f32 %v4603_v32, %v4601_v35  ;;  %v4980_v29 = vld [vmem:[#allocation25_spill] sm:$0xff]  ;;  %v4981_v34 = vld [vmem:[#allocation26_spill] sm:$0xff] }
 0x777   : >> { %3534 = vpow2.f32 %v2430_v40 }
 0x778   : >> { %v4609_v17 = vpop.eup %3524  ;;  %v2432_v10 = vmul.f32 1.442695, %v2320_v54  ;;  %v2434_v12 = vmul.f32 1.442695, %v2321_v33  ;;  %2525 = vadd.xlane.f32.xlu0 %v2524_v3 }
 0x779   : >> { %v4611_v26 = vpop.eup %3526  ;;  %v2253_v38 = vpop.xlane.xlu1 %2252 }
 0x77a   : >> { %3536 = vpow2.f32 %v2432_v10  ;;  %v2322_v51 = vsub.f32 %v4977_v61, %v2253_v38  ;;  %v2323_v47 = vsub.f32 %v4978_v46, %v2253_v38  ;;  %v2527_v5 = vadd.f32 %v4611_v26, %v4609_v17 }
 0x77b   : >> { %3538 = vpow2.f32 %v2434_v12 }
 0x77c   : >> { %v4617_v14 = vpop.eup %3528  ;;  %v2436_v30 = vmul.f32 1.442695, %v2322_v51  ;;  %v2438_v45 = vmul.f32 1.442695, %v2323_v47  ;;  %2528 = vadd.xlane.f32.xlu1 %v2527_v5  ;;  %v4984_v51 = vld [vmem:[#allocation27_spill] sm:$0xff]  ;;  %v4985_v47 = vld [vmem:[#allocation28_spill] sm:$0xff] }
 0x77d   : >> { %4979 = vst [vmem:[#allocation23_spill] sm:$0xff] %v4617_v14  ;;  %v4619_v24 = vpop.eup %3530  ;;  %v2256_v16 = vpop.xlane.xlu1 %2255 }
 0x77e   : >> { %3540 = vpow2.f32 %v2436_v30  ;;  %v2324_v40 = vsub.f32 %v4980_v29, %v2256_v16  ;;  %v2325_v54 = vsub.f32 %v4981_v34, %v2256_v16  ;;  %v2530_v33 = vadd.f32 %v4619_v24, %v4617_v14 }
 0x77f   : >> { %3542 = vpow2.f32 %v2438_v45 }
 0x780   : >> { %v4625_v3 = vpop.eup %3532  ;;  %v2440_v10 = vmul.f32 1.442695, %v2324_v40  ;;  %v2442_v12 = vmul.f32 1.442695, %v2325_v54  ;;  %2531 = vadd.xlane.f32.xlu0 %v2530_v33  ;;  %v4988_v54 = vld [vmem:[#allocation29_spill] sm:$0xff] }
 0x781   : >> { %4982 = vst [vmem:[#allocation24_spill] sm:$0xff] %v4625_v3  ;;  %v4627_v38 = vpop.eup %3534  ;;  %v2259_v61 = vpop.xlane.xlu1 %2258 }
 0x782   : >> { %4983 = vst [vmem:[#allocation25_spill] sm:$0xff] %v4627_v38  ;;  %3544 = vpow2.f32 %v2440_v10  ;;  %v2326_v46 = vsub.f32 %v4984_v51, %v2259_v61  ;;  %v2327_v5 = vsub.f32 %v4985_v47, %v2259_v61  ;;  %v2533_v30 = vadd.f32 %v4627_v38, %v4625_v3  ;;  %v4989_v10 = vld [vmem:[#allocation30_spill] sm:$0xff] }
 0x783   : >> { %3546 = vpow2.f32 %v2442_v12 }
 0x784   : >> { %v4633_v16 = vpop.eup %3536  ;;  %v2444_v45 = vmul.f32 1.442695, %v2326_v46  ;;  %v2446_v29 = vmul.f32 1.442695, %v2327_v5  ;;  %2534 = vadd.xlane.f32.xlu1 %v2533_v30  ;;  %v4991_v30 = vld [vmem:[#allocation31_spill] sm:$0xff] }
 0x785   : >> { %4986 = vst [vmem:[#allocation26_spill] sm:$0xff] %v4633_v16  ;;  %v4635_v40 = vpop.eup %3538  ;;  %v2262_v34 = vpop.xlane.xlu1 %2261 }
 0x786   : >> { %4987 = vst [vmem:[#allocation27_spill] sm:$0xff] %v4635_v40  ;;  %3548 = vpow2.f32 %v2444_v45  ;;  %v2328_v33 = vsub.f32 %v4988_v54, %v2262_v34  ;;  %v2329_v14 = vsub.f32 %v4989_v10, %v2262_v34  ;;  %v2536_v61 = vadd.f32 %v4635_v40, %v4633_v16  ;;  %v4992_v45 = vld [vmem:[#allocation32_spill] sm:$0xff] }
 0x787   : >> { %3550 = vpow2.f32 %v2446_v29 }
 0x788   : >> { %v4641_v51 = vpop.eup %3540  ;;  %v2448_v12 = vmul.f32 1.442695, %v2328_v33  ;;  %v2450_v47 = vmul.f32 1.442695, %v2329_v14  ;;  %2537 = vadd.xlane.f32.xlu0 %v2536_v61  ;;  %v4993_v61 = vld [vmem:[#allocation33_spill] sm:$0xff] }
 0x789   : >> { %4990 = vst [vmem:[#allocation28_spill] sm:$0xff] %v4641_v51  ;;  %v4643_v46 = vpop.eup %3542  ;;  %v2265_v5 = vpop.xlane.xlu1 %2264 }
 0x78a   : >> { %3552 = vpow2.f32 %v2448_v12  ;;  %v2330_v3 = vsub.f32 %v4991_v30, %v2265_v5  ;;  %v2331_v38 = vsub.f32 %v4992_v45, %v2265_v5  ;;  %v2539_v34 = vadd.f32 %v4643_v46, %v4641_v51  ;;  %v4994_v12 = vld [vmem:[#allocation34_spill] sm:$0xff] }
 0x78b   : >> { %3554 = vpow2.f32 %v2450_v47 }
 0x78c   : >> { %v4649_v54 = vpop.eup %3544  ;;  %v2452_v29 = vmul.f32 1.442695, %v2330_v3  ;;  %v2454_v10 = vmul.f32 1.442695, %v2331_v38  ;;  %2540 = vadd.xlane.f32.xlu1 %v2539_v34 }
 0x78d   : >> { %v4651_v33 = vpop.eup %3546  ;;  %v2268_v14 = vpop.xlane.xlu1 %2267 }
 0x78e   : >> { %3556 = vpow2.f32 %v2452_v29  ;;  %v2332_v16 = vsub.f32 %v4993_v61, %v2268_v14  ;;  %v2333_v40 = vsub.f32 %v4994_v12, %v2268_v14  ;;  %v2542_v5 = vadd.f32 %v4651_v33, %v4649_v54  ;;  %v4995_v29 = vld [vmem:[#allocation35_spill] sm:$0xff] }
 0x78f   : >> { %3558 = vpow2.f32 %v2454_v10 }
 0x790   : >> { %v4657_v30 = vpop.eup %3548  ;;  %v2456_v47 = vmul.f32 1.442695, %v2332_v16  ;;  %v2458_v45 = vmul.f32 1.442695, %v2333_v40  ;;  %2543 = vadd.xlane.f32.xlu0 %v2542_v5 }
 0x791   : >> { %v4659_v3 = vpop.eup %3550  ;;  %v2271_v38 = vpop.xlane.xlu1 %2270 }
 0x792   : >> { %3560 = vpow2.f32 %v2456_v47  ;;  %v2334_v34 = vsub.f32 %v4427_v6, %v2271_v38  ;;  %v2335_v51 = vsub.f32 %v4995_v29, %v2271_v38  ;;  %v2545_v14 = vadd.f32 %v4659_v3, %v4657_v30 }
 0x793   : >> { %3562 = vpow2.f32 %v2458_v45 }
 0x794   : >> { %v4665_v61 = vpop.eup %3552  ;;  %v2460_v10 = vmul.f32 1.442695, %v2334_v34  ;;  %v2462_v12 = vmul.f32 1.442695, %v2335_v51  ;;  %2546 = vadd.xlane.f32.xlu1 %v2545_v14 }
 0x795   : >> { %4996 = vst [vmem:[#allocation29_spill] sm:$0xff] %v4665_v61  ;;  %v4667_v16 = vpop.eup %3554 }
 0x796   : >> { %3564 = vpow2.f32 %v2460_v10  ;;  %v2548_v40 = vadd.f32 %v4667_v16, %v4665_v61 }
 0x797   : >> { %3566 = vpow2.f32 %v2462_v12 }
 0x798   : >> { %v4671_v5 = vpop.eup %3556  ;;  %2549 = vadd.xlane.f32.xlu0 %v2548_v40 }
 0x799   : >> { %4997 = vst [vmem:[#allocation30_spill] sm:$0xff] %v4671_v5  ;;  %v4673_v6 = vpop.eup %3558 }
 0x79a   : >> { %4998 = vst [vmem:[#allocation31_spill] sm:$0xff] %v4673_v6  ;;  %v2551_v47 = vadd.f32 %v4673_v6, %v4671_v5 }
 0x79c   : >> { %v4677_v45 = vpop.eup %3560  ;;  %2552 = vadd.xlane.f32.xlu1 %v2551_v47 }
 0x79d   : >> { %4999 = vst [vmem:[#allocation32_spill] sm:$0xff] %v4677_v45  ;;  %v4679_v51 = vpop.eup %3562 }
 0x79e   : >> { %5000 = vst [vmem:[#allocation33_spill] sm:$0xff] %v4679_v51  ;;  %v2554_v38 = vadd.f32 %v4679_v51, %v4677_v45 }
 0x7a0   : >> { %v4683_v34 = vpop.eup %3564  ;;  %2555 = vadd.xlane.f32.xlu0 %v2554_v38 }
 0x7a1   : >> { %5001 = vst [vmem:[#allocation34_spill] sm:$0xff] %v4683_v34  ;;  %v4685_v29 = vpop.eup %3566 }
 0x7a2   : >> { %5002 = vst [vmem:[#allocation35_spill] sm:$0xff] %v4685_v29  ;;  %v2557_v14 = vadd.f32 %v4685_v29, %v4683_v34 }
 0x7a4   : >> { %2558 = vadd.xlane.f32.xlu1 %v2557_v14 }
 0x7b5   : >> { %v2466_v10 = vpop.xlane.xlu1 %2465 }
 0x7b6   : >> { %3568 = vrcp.f32 %v2466_v10 }
 0x7b9   : >> { %v2469_v12 = vpop.xlane.xlu1 %2468 }
 0x7ba   : >> { %3570 = vrcp.f32 %v2469_v12  ;;  %v1757_v12 = vld [vmem:[%s4694_s24 + $0x8] sm:$0xff] }
 0x7bd   : >> { %v2472_v40 = vpop.xlane.xlu1 %2471 }
 0x7be   : >> { %3572 = vrcp.f32 %v2472_v40  ;;  %v2657_v40 = vpack.c.bf16 %v1757_v12, %v1757_v12 }
 0x7c0   : >> { %v3569_v5 = vpop.eup %3568  ;;  %2722 = vmatprep.mubr.bf16.mxu1 %v2657_v40 }
 0x7c1   : >> { %v2475_v47 = vpop.xlane.xlu1 %2474  ;;  %v2593_v51 = vmul.f32 %v3569_v5, %v4443_v43  ;;  %v2592_v14 = vmul.f32 %v3569_v5, %v4441_v13 }
 0x7c2   : >> { %3574 = vrcp.f32 %v2475_v47 }
 0x7c4   : >> { %v3571_v45 = vpop.eup %3570 }
 0x7c5   : >> { %v2478_v38 = vpop.xlane.xlu1 %2477  ;;  %v2595_v61 = vmul.f32 %v3571_v45, %v4451_v49  ;;  %v2594_v10 = vmul.f32 %v3571_v45, %v4449_v44 }
 0x7c6   : >> { %3576 = vrcp.f32 %v2478_v38 }
 0x7c7   : >> { %v2659_v34 = vpack.c.bf16 %v2595_v61, %v2593_v51  ;;  %v2658_v29 = vpack.c.bf16 %v2594_v10, %v2592_v14 }
 0x7c8   : >> { %v3573_v6 = vpop.eup %3572 }
 0x7c9   : >> { %2690 = vmatprep.subr.bf16.mxu1 %v2659_v34  ;;  %v2481_v47 = vpop.xlane.xlu1 %2480  ;;  %v2597_v13 = vmul.f32 %v3573_v6, %v4459_v8  ;;  %v2596_v5 = vmul.f32 %v3573_v6, %v4457_v53 }
 0x7ca   : >> { %3578 = vrcp.f32 %v2481_v47  ;;  %2691 = vmatpush1.bf16.xpose.msra.mxu1 %v2658_v29 }
 0x7cc   : >> { %v3575_v43 = vpop.eup %3574 }
 0x7cd   : >> { %v2484_v49 = vpop.xlane.xlu1 %2483  ;;  %v2599_v44 = vmul.f32 %v3575_v43, %v4467_v4  ;;  %v2598_v45 = vmul.f32 %v3575_v43, %v4465_v1 }
 0x7ce   : >> { %3580 = vrcp.f32 %v2484_v49 }
 0x7cf   : >> { %v2661_v12 = vpack.c.bf16 %v2599_v44, %v2597_v13  ;;  %v2660_v61 = vpack.c.bf16 %v2598_v45, %v2596_v5 }
 0x7d0   : >> { %v3577_v34 = vpop.eup %3576 }
 0x7d1   : >> { %2692 = vmatprep.subr.bf16.mxu1 %v2661_v12  ;;  %v2487_v51 = vpop.xlane.xlu1 %2486  ;;  %v2601_v14 = vmul.f32 %v3577_v34, %v4475_v50  ;;  %v2600_v4 = vmul.f32 %v3577_v34, %v4473_v58 }
 0x7d2   : >> { %3582 = vrcp.f32 %v2487_v51  ;;  %2693 = vmatpush1.bf16.xpose.msra.mxu1 %v2660_v61 }
 0x7d4   : >> { %v3579_v38 = vpop.eup %3578 }
 0x7d5   : >> { %v2490_v29 = vpop.xlane.xlu1 %2489  ;;  %v2603_v8 = vmul.f32 %v3579_v38, %v4483_v9  ;;  %v2602_v53 = vmul.f32 %v3579_v38, %v4481_v60 }
 0x7d6   : >> { %3584 = vrcp.f32 %v2490_v29 }
 0x7d7   : >> { %v2663_v6 = vpack.c.bf16 %v2603_v8, %v2601_v14  ;;  %v2662_v1 = vpack.c.bf16 %v2602_v53, %v2600_v4 }
 0x7d8   : >> { %v3581_v40 = vpop.eup %3580 }
 0x7d9   : >> { %2694 = vmatprep.subr.bf16.mxu1 %v2663_v6  ;;  %v2493_v10 = vpop.xlane.xlu1 %2492  ;;  %v2605_v49 = vmul.f32 %v3581_v40, %v4491_v11  ;;  %v2604_v9 = vmul.f32 %v3581_v40, %v4489_v63 }
 0x7da   : >> { %3586 = vrcp.f32 %v2493_v10  ;;  %2695 = vmatpush1.bf16.xpose.msra.mxu1 %v2662_v1 }
 0x7dc   : >> { %v3583_v47 = vpop.eup %3582 }
 0x7dd   : >> { %v2496_v43 = vpop.xlane.xlu1 %2495  ;;  %v2607_v50 = vmul.f32 %v3583_v47, %v4499_v42  ;;  %v2606_v58 = vmul.f32 %v3583_v47, %v4497_v19 }
 0x7de   : >> { %3588 = vrcp.f32 %v2496_v43 }
 0x7df   : >> { %v2665_v13 = vpack.c.bf16 %v2607_v50, %v2605_v49  ;;  %v2664_v60 = vpack.c.bf16 %v2606_v58, %v2604_v9 }
 0x7e0   : >> { %v3585_v5 = vpop.eup %3584 }
 0x7e1   : >> { %2696 = vmatprep.subr.bf16.mxu1 %v2665_v13  ;;  %v2499_v44 = vpop.xlane.xlu1 %2498  ;;  %v2609_v61 = vmul.f32 %v3585_v5, %v4507_v2  ;;  %v2608_v42 = vmul.f32 %v3585_v5, %v4505_v23 }
 0x7e2   : >> { %3590 = vrcp.f32 %v2499_v44  ;;  %2697 = vmatpush1.bf16.xpose.msra.mxu1 %v2664_v60 }
 0x7e4   : >> { %v3587_v45 = vpop.eup %3586 }
 0x7e5   : >> { %v2502_v12 = vpop.xlane.xlu0 %2501  ;;  %v2611_v11 = vmul.f32 %v3587_v45, %v4515_v15  ;;  %v2610_v63 = vmul.f32 %v3587_v45, %v4513_v25 }
 0x7e6   : >> { %3592 = vrcp.f32 %v2502_v12 }
 0x7e7   : >> { %v2667_v51 = vpack.c.bf16 %v2611_v11, %v2609_v61  ;;  %v2666_v19 = vpack.c.bf16 %v2610_v63, %v2608_v42 }
 0x7e8   : >> { %v3589_v38 = vpop.eup %3588 }
 0x7e9   : >> { %2698 = vmatprep.subr.bf16.mxu1 %v2667_v51  ;;  %v2505_v34 = vpop.xlane.xlu1 %2504  ;;  %v2613_v8 = vmul.f32 %v3589_v38, %v4523_v22  ;;  %v2612_v15 = vmul.f32 %v3589_v38, %v4521_v28 }
 0x7ea   : >> { %3594 = vrcp.f32 %v2505_v34  ;;  %2699 = vmatpush1.bf16.xpose.msra.mxu1 %v2666_v19 }
 0x7ec   : >> { %v3591_v29 = vpop.eup %3590 }
 0x7ed   : >> { %v2508_v14 = vpop.xlane.xlu0 %2507  ;;  %v2615_v2 = vmul.f32 %v3591_v29, %v4531_v41  ;;  %v2614_v23 = vmul.f32 %v3591_v29, %v4529_v31 }
 0x7ee   : >> { %3596 = vrcp.f32 %v2508_v14 }
 0x7ef   : >> { %v2669_v4 = vpack.c.bf16 %v2615_v2, %v2613_v8  ;;  %v2668_v25 = vpack.c.bf16 %v2614_v23, %v2612_v15 }
 0x7f0   : >> { %v3593_v6 = vpop.eup %3592 }
 0x7f1   : >> { %2700 = vmatprep.subr.bf16.mxu1 %v2669_v4  ;;  %v2511_v53 = vpop.xlane.xlu1 %2510  ;;  %v2617_v40 = vmul.f32 %v3593_v6, %v4539_v7  ;;  %v2616_v41 = vmul.f32 %v3593_v6, %v4537_v36 }
 0x7f2   : >> { %3598 = vrcp.f32 %v2511_v53  ;;  %2701 = vmatpush1.bf16.xpose.msra.mxu1 %v2668_v25 }
 0x7f4   : >> { %v3595_v1 = vpop.eup %3594 }
 0x7f5   : >> { %v2514_v10 = vpop.xlane.xlu0 %2513  ;;  %v2619_v22 = vmul.f32 %v3595_v1, %v4547_v52  ;;  %v2618_v28 = vmul.f32 %v3595_v1, %v4545_v39  ;;  %v5003_v1 = vld [vmem:[#allocation25_spill] sm:$0xff] }
 0x7f6   : >> { %3600 = vrcp.f32 %v2514_v10  ;;  %v5004_v10 = vld [vmem:[#allocation23_spill] sm:$0xff] }
 0x7f7   : >> { %v2671_v47 = vpack.c.bf16 %v2619_v22, %v2617_v40  ;;  %v2670_v31 = vpack.c.bf16 %v2618_v28, %v2616_v41  ;;  %v5005_v40 = vld [vmem:[#allocation24_spill] sm:$0xff] }
 0x7f8   : >> { %v3597_v49 = vpop.eup %3596 }
 0x7f9   : >> { %2702 = vmatprep.subr.bf16.mxu1 %v2671_v47  ;;  %v2517_v43 = vpop.xlane.xlu1 %2516  ;;  %v2621_v58 = vmul.f32 %v3597_v49, %v4555_v55  ;;  %v2620_v52 = vmul.f32 %v3597_v49, %v4553_v48 }
 0x7fa   : >> { %3602 = vrcp.f32 %v2517_v43  ;;  %2703 = vmatpush1.bf16.xpose.msra.mxu1 %v2670_v31  ;;  %v5006_v43 = vld [vmem:[#allocation27_spill] sm:$0xff] }
 0x7fc   : >> { %v3599_v50 = vpop.eup %3598 }
 0x7fd   : >> { %v2520_v9 = vpop.xlane.xlu0 %2519  ;;  %v2623_v7 = vmul.f32 %v3599_v50, %v4563_v57  ;;  %v2622_v36 = vmul.f32 %v3599_v50, %v4561_v56  ;;  %v5007_v50 = vld [vmem:[#allocation26_spill] sm:$0xff] }
 0x7fe   : >> { %3604 = vrcp.f32 %v2520_v9 }
 0x7ff   : >> { %v2673_v13 = vpack.c.bf16 %v2623_v7, %v2621_v58  ;;  %v2672_v39 = vpack.c.bf16 %v2622_v36, %v2620_v52  ;;  %v5008_v58 = vld [vmem:[#allocation28_spill] sm:$0xff] }
 0x800   : >> { %v3601_v44 = vpop.eup %3600 }
 0x801   : >> { %2704 = vmatprep.subr.bf16.mxu1 %v2673_v13  ;;  %v2523_v60 = vpop.xlane.xlu1 %2522  ;;  %v2625_v12 = vmul.f32 %v3601_v44, %v4571_v0  ;;  %v2624_v57 = vmul.f32 %v3601_v44, %v4569_v18 }
 0x802   : >> { %3606 = vrcp.f32 %v2523_v60  ;;  %2705 = vmatpush1.bf16.xpose.msra.mxu1 %v2672_v39 }
 0x804   : >> { %v3603_v5 = vpop.eup %3602 }
 0x805   : >> { %v2526_v45 = vpop.xlane.xlu0 %2525  ;;  %v2627_v55 = vmul.f32 %v3603_v5, %v4579_v62  ;;  %v2626_v48 = vmul.f32 %v3603_v5, %v4577_v27 }
 0x806   : >> { %3608 = vrcp.f32 %v2526_v45 }
 0x807   : >> { %v2675_v61 = vpack.c.bf16 %v2627_v55, %v2625_v12  ;;  %v2674_v56 = vpack.c.bf16 %v2626_v48, %v2624_v57 }
 0x808   : >> { %v3605_v42 = vpop.eup %3604 }
 0x809   : >> { %2706 = vmatprep.subr.bf16.mxu1 %v2675_v61  ;;  %v2529_v11 = vpop.xlane.xlu1 %2528  ;;  %v2629_v19 = vmul.f32 %v3605_v42, %v4587_v20  ;;  %v2628_v62 = vmul.f32 %v3605_v42, %v4585_v37  ;;  %v5009_v42 = vld [vmem:[#allocation31_spill] sm:$0xff] }
 0x80a   : >> { %3610 = vrcp.f32 %v2529_v11  ;;  %2707 = vmatpush1.bf16.xpose.msra.mxu1 %v2674_v56 }
 0x80c   : >> { %v3607_v63 = vpop.eup %3606 }
 0x80d   : >> { %v2532_v51 = vpop.xlane.xlu0 %2531  ;;  %v2631_v0 = vmul.f32 %v3607_v63, %v4595_v21  ;;  %v2630_v18 = vmul.f32 %v3607_v63, %v4593_v59 }
 0x80e   : >> { %3612 = vrcp.f32 %v2532_v51 }
 0x80f   : >> { %v2677_v34 = vpack.c.bf16 %v2631_v0, %v2629_v19  ;;  %v2676_v27 = vpack.c.bf16 %v2630_v18, %v2628_v62  ;;  %v5012_v18 = vld [vmem:[#allocation33_spill] sm:$0xff] }
 0x810   : >> { %v3609_v29 = vpop.eup %3608 }
 0x811   : >> { %2708 = vmatprep.subr.bf16.mxu1 %v2677_v34  ;;  %v2535_v38 = vpop.xlane.xlu1 %2534  ;;  %v2633_v2 = vmul.f32 %v3609_v29, %v4603_v32  ;;  %v2632_v21 = vmul.f32 %v3609_v29, %v4601_v35  ;;  %v5014_v29 = vld [vmem:[#allocation32_spill] sm:$0xff] }
 0x812   : >> { %3614 = vrcp.f32 %v2535_v38  ;;  %2709 = vmatpush1.bf16.xpose.msra.mxu1 %v2676_v27  ;;  %v5013_v27 = vld [vmem:[#allocation35_spill] sm:$0xff] }
 0x814   : >> { %v3611_v14 = vpop.eup %3610 }
 0x815   : >> { %v2538_v8 = vpop.xlane.xlu0 %2537  ;;  %v2635_v20 = vmul.f32 %v3611_v14, %v4611_v26  ;;  %v2634_v37 = vmul.f32 %v3611_v14, %v4609_v17  ;;  %v5015_v14 = vld [vmem:[#allocation34_spill] sm:$0xff] }
 0x816   : >> { %3616 = vrcp.f32 %v2538_v8 }
 0x817   : >> { %v2679_v15 = vpack.c.bf16 %v2635_v20, %v2633_v2  ;;  %v2678_v59 = vpack.c.bf16 %v2634_v37, %v2632_v21  ;;  %v1756_v21 = vld [vmem:[%s4694_s24] sm:$0xff]  ;;  %s4851_s24 = scalar_lea.sflag (%p1730_p11), [#allocation5], %s323_s21 }
 0x818   : >> { %v3613_v4 = vpop.eup %3612  ;;  %v2656_v37 = vpack.c.bf16 %v1756_v21, %v1756_v21 }
 0x819   : >> { %2710 = vmatprep.subr.bf16.mxu1 %v2679_v15  ;;  %v2541_v23 = vpop.xlane.xlu1 %2540  ;;  %v2637_v6 = vmul.f32 %v3613_v4, %v4619_v24  ;;  %v2636_v26 = vmul.f32 %v3613_v4, %v5004_v10 }
 0x81a   : >> { %3618 = vrcp.f32 %v2541_v23  ;;  %2711 = vmatpush1.bf16.xpose.msra.mxu1 %v2678_v59 }
 0x81c   : >> { %v3615_v25 = vpop.eup %3614 }
 0x81d   : >> { %v2544_v53 = vpop.xlane.xlu0 %2543  ;;  %v2639_v32 = vmul.f32 %v3615_v25, %v5003_v1  ;;  %v2638_v35 = vmul.f32 %v3615_v25, %v5005_v40  ;;  %v5016_v1 = vmov (%p1730_p11), 0  }
 0x81e   : >> { %3620 = vrcp.f32 %v2544_v53  ;;  %2879 = vmatprep.mubr.bf16.mxu0 (%p1730_p11), %v5016_v1  ;;  %3633 = vset.pattern.permute.xlu1 (%p1730_p11), %v5016_v1 }
 0x81f   : >> { %v2681_v22 = vpack.c.bf16 %v2639_v32, %v2637_v6  ;;  %v2680_v17 = vpack.c.bf16 %v2638_v35, %v2636_v26  ;;  %3632 = vset.pattern.permute.xlu0 (%p1730_p11), %v5016_v1 }
 0x820   : >> { %v3617_v28 = vpop.eup %3616 }
 0x821   : >> { %2712 = vmatprep.subr.bf16.mxu1 %v2681_v22  ;;  %v2547_v41 = vpop.xlane.xlu1 %2546  ;;  %v2641_v49 = vmul.f32 %v3617_v28, %v5006_v43  ;;  %v2640_v9 = vmul.f32 %v3617_v28, %v5007_v50 }
 0x822   : >> { %3622 = vrcp.f32 %v2547_v41  ;;  %2713 = vmatpush1.bf16.xpose.msra.mxu1 %v2680_v17 }
 0x824   : >> { %v3619_v47 = vpop.eup %3618 }
 0x825   : >> { %v2550_v31 = vpop.xlane.xlu0 %2549  ;;  %v2643_v24 = vmul.f32 %v3619_v47, %v4643_v46  ;;  %v2642_v7 = vmul.f32 %v3619_v47, %v5008_v58 }
 0x826   : >> { %3624 = vrcp.f32 %v2550_v31 }
 0x827   : >> { %v2683_v52 = vpack.c.bf16 %v2643_v24, %v2641_v49  ;;  %v2682_v36 = vpack.c.bf16 %v2642_v7, %v2640_v9 }
 0x828   : >> { %v3621_v39 = vpop.eup %3620 }
 0x829   : >> { %2714 = vmatprep.subr.bf16.mxu1 %v2683_v52  ;;  %v2553_v13 = vpop.xlane.xlu1 %2552  ;;  %v2645_v5 = vmul.f32 %v3621_v39, %v4651_v33  ;;  %v2644_v46 = vmul.f32 %v3621_v39, %v4649_v54  ;;  %v5010_v33 = vld [vmem:[#allocation29_spill] sm:$0xff]  ;;  %v2767_v39 = vld [vmem:[%s4900_s8] sm:$0xff] (%p1730_p11) }
 0x82a   : >> { %3626 = vrcp.f32 %v2553_v13  ;;  %2715 = vmatpush1.bf16.xpose.msra.mxu1 %v2682_v36  ;;  %v2769_v13 = vld [vmem:[%s4900_s8 + $0x10] sm:$0xff] (%p1730_p11)  ;;  %2777 = vperm.xlu0 (%p1730_p11), %3632, %v2767_v39   ;;  %v5026_v39 = vld [vmem:[#allocation20_spill] sm:$0xff] (%p1730_p11) }
 0x82b   : > { %2787 = vperm.xlu1 (%p1730_p11), %3633, %v2769_v13  }
 0x82c   : >> { %v3623_v60 = vpop.eup %3622 }
 0x82d   : >> { %v2556_v44 = vpop.xlane.xlu0 %2555  ;;  %v2647_v45 = vmul.f32 %v3623_v60, %v4659_v3  ;;  %v2646_v12 = vmul.f32 %v3623_v60, %v4657_v30  ;;  %v5011_v3 = vld [vmem:[#allocation30_spill] sm:$0xff] }
 0x82e   : >> { %3628 = vrcp.f32 %v2556_v44  ;;  %v2770_v60 = vld [vmem:[%s4900_s8 + $0x18] sm:$0xff] (%p1730_p11)  ;;  %v2768_v44 = vld [vmem:[%s4900_s8 + $0x8] sm:$0xff] (%p1730_p11) }
 0x82f   : >> { %v2685_v55 = vpack.c.bf16 %v2647_v45, %v2645_v5  ;;  %v2684_v57 = vpack.c.bf16 %v2646_v12, %v2644_v46  ;;  %v3634_v45 = vld [vmem:[%s4899_s7] sm:$0xff] (%p1730_p11)   ;;  %2792 = vperm.xlu1 (%p1730_p11), %3633, %v2770_v60   ;;  %2782 = vperm.xlu0 (%p1730_p11), %3632, %v2768_v44   ;;  %v3635_v46 = vld [vmem:[%s4899_s7 + $0x10] sm:$0xff] (%p1730_p11)   ;;  %v2772_v12 = vld [vmem:[%s4900_s8 + $0x28] sm:$0xff] (%p1730_p11) }
 0x830   : >> { %v3625_v61 = vpop.eup %3624 }
 0x831   : >> { %2716 = vmatprep.subr.bf16.mxu1 %v2685_v55  ;;  %v2559_v48 = vpop.xlane.xlu1 %2558  ;;  %v2649_v11 = vmul.f32 %v3625_v61, %v4667_v16  ;;  %v2648_v51 = vmul.f32 %v3625_v61, %v5010_v33  ;;  %v2771_v55 = vld [vmem:[%s4900_s8 + $0x20] sm:$0xff] (%p1730_p11)  ;;  %v3636_v61 = vld [vmem:[%s4899_s7 + $0x8] sm:$0xff] (%p1730_p11)  }
 0x832   : >> { %3630 = vrcp.f32 %v2559_v48  ;;  %2717 = vmatpush1.bf16.xpose.msra.mxu1 %v2684_v57  ;;  %v2774_v57 = vld [vmem:[%s4900_s8 + $0x38] sm:$0xff] (%p1730_p11)  ;;  %v2773_v48 = vld [vmem:[%s4900_s8 + $0x30] sm:$0xff] (%p1730_p11) }
 0x833   : > { %2802 = vperm.xlu1 (%p1730_p11), %3633, %v2772_v12   ;;  %2797 = vperm.xlu0 (%p1730_p11), %3632, %v2771_v55   ;;  %v5027_v12 = vld [vmem:[#allocation16_spill] sm:$0xff] (%p1730_p11) }
 0x834   : >> { %v3627_v56 = vpop.eup %3626 }
 0x835   : >> { %v2651_v63 = vmul.f32 %v3627_v56, %v5009_v42  ;;  %v2650_v54 = vmul.f32 %v3627_v56, %v5011_v3  ;;  %v3637_v56 = vld [vmem:[%s4899_s7 + $0x18] sm:$0xff] (%p1730_p11)  }
 0x837   : >> { %v2687_v19 = vpack.c.bf16 %v2651_v63, %v2649_v11  ;;  %v2686_v30 = vpack.c.bf16 %v2650_v54, %v2648_v51  ;;  %2812 = vperm.xlu1 (%p1730_p11), %3633, %v2774_v57   ;;  %2807 = vperm.xlu0 (%p1730_p11), %3632, %v2773_v48   ;;  %v5028_v57 = vld [vmem:[#allocation19_spill] sm:$0xff] (%p1730_p11) }
 0x838   : >> { %v3629_v0 = vpop.eup %3628 }
 0x839   : >> { %2718 = vmatprep.subr.bf16.mxu1 %v2687_v19  ;;  %v2653_v34 = vmul.f32 %v3629_v0, %v5012_v18  ;;  %v2652_v16 = vmul.f32 %v3629_v0, %v5014_v29 }
 0x83a   : >> { %2719 = vmatpush1.bf16.xpose.msra.mxu1 %v2686_v30 }
 0x83c   : >> { %v3631_v62 = vpop.eup %3630 }
 0x83d   : >> { %v2655_v38 = vmul.f32 %v3631_v62, %v5013_v27  ;;  %v2654_v8 = vmul.f32 %v3631_v62, %v5015_v14 }
 0x83f   : >> { %v2689_v2 = vpack.c.bf16 %v2655_v38, %v2653_v34  ;;  %v2688_v20 = vpack.c.bf16 %v2654_v8, %v2652_v16  ;;  %v5017_v16 = vld [vmem:[#allocation9_spill] sm:$0xff] (%p1730_p11)  ;;  %v5018_v8 = vld [vmem:[#allocation14_spill] sm:$0xff] (%p1730_p11) }
 0x841   : >> { %2720 = vmatprep.subr.bf16.mxu1 %v2689_v2 }
 0x842   : >> { %2721 = vmatpush1.bf16.xpose.msra.mxu1 %v2688_v20 }
 0x849   : >> { %2723 = vmatmul.mubr.bf16.vlgmr.msra.gmra.mrb[0].mxu1 %v2656_v37 }
 0x84a   : > { %2899 = vmatprep.mubr.bf16.mxu1 (%p1730_p11), %v5016_v1 }
 0x8a9   : > { %v2778_v42 = vpop.permute.xlu0 (%p1730_p11), %2777 }
 0x8aa   : > { %v2788_v11 = vpop.permute.xlu1 (%p1730_p11), %2787 }
 0x8ae   : > { %v2793_v63 = vpop.permute.xlu1 (%p1730_p11), %2792  ;;  %v2783_v33 = vpop.permute.xlu0 (%p1730_p11), %2782 }
 0x8b2   : > { %v2803_v51 = vpop.permute.xlu1 (%p1730_p11), %2802  ;;  %v2798_v3 = vpop.permute.xlu0 (%p1730_p11), %2797 }
 0x919   : > { %1732 = sbr.rel (!%p1730_p11) target bundleno = 1321 (0x529), region = 102 }
 0x91c   : >> { %v2724_v15 = vpop.f32.mrb[0].mxu1 }
 0x91d   : >> { %2733 = vst [vmem:[%s2732_s17] sm:$0xff] %v2724_v15  ;;  %v2726_v59 = vpop.f32.mrb[1].mxu1 }
 0x91e   : >> { %2734 = vst [vmem:[%s2732_s17 + $0x8] sm:$0xff] %v2726_v59  ;;  %v2728_v23 = vpop.f32.mrb[2].mxu1  ;;  %v5019_v59 = vld [vmem:[#allocation7_spill] sm:$0xff] (%p1730_p11)  ;;  %s3638_s17 = scalar_lea.vmem (%p1730_p11), %s4839_s29, 2048 }
 0x91f   : >> { %v2729_v4 = vpop.f32.mrb[3].mxu1  ;;  %p3639_p12 = scmp.ne.s32.totalorder (%p1730_p11), %s4839_s29, %s3638_s17  ;;  %p3646_p2 = scmp.lt.s32.totalorder (%p1730_p11), %s3644_s26, %s3638_s17 }
 0x920   : > { %v5020_v4 = vld [vmem:[#allocation12_spill] sm:$0xff] }
 0x921   : > { %p3640_p13 = pnand %p3639_p12, %p3804_p5  ;;  %p3647_p3 = por %p3646_p2, %p3645_p1 }
 0x923   : > { %p3641_p0 = pneg %p3640_p13 }
 0x925   : > { %v2744_v25 = vld [vmem:[#allocation3 + $0x8] sm:$0xff]  ;;  %v2746_v53 = vld [vmem:[#allocation3 + $0x18] sm:$0xff]  ;;  %v2743_v6 = vld [vmem:[#allocation3] sm:$0xff]  ;;  %p3648_p4 = pnand %p3647_p3, %p3641_p0 }
 0x926   : > { %v2760_v32 = vpack.c.bf16 %v2746_v53, %v2744_v25  ;;  %v2745_v10 = vld [vmem:[#allocation3 + $0x10] sm:$0xff]  ;;  %v2748_v26 = vld [vmem:[#allocation3 + $0x28] sm:$0xff]  ;;  %v2750_v40 = vld [vmem:[#allocation3 + $0x38] sm:$0xff] }
 0x927   : > { %v2759_v35 = vpack.c.bf16 %v2745_v10, %v2743_v6  ;;  %v2762_v22 = vpack.c.bf16 %v2750_v40, %v2748_v26  ;;  %v2747_v17 = vld [vmem:[#allocation3 + $0x20] sm:$0xff]  ;;  %v2749_v41 = vld [vmem:[#allocation3 + $0x30] sm:$0xff]  ;;  %v2752_v28 = vld [vmem:[#allocation3 + $0x48] sm:$0xff] }
 0x928   : > { %2847 = vmatprep.subr.bf16.mxu0 %v2760_v32  ;;  %3357 = vmatprep.subr.bf16.mxu1 %v2760_v32  ;;  %v2754_v47 = vld [vmem:[#allocation3 + $0x58] sm:$0xff]  ;;  %v2761_v31 = vpack.c.bf16 %v2749_v41, %v2747_v17  ;;  %v2751_v43 = vld [vmem:[#allocation3 + $0x40] sm:$0xff]  ;;  %v2753_v49 = vld [vmem:[#allocation3 + $0x50] sm:$0xff]  ;;  %v2813_v41 = vpop.permute.xlu1 %2812 }
 0x929   : > { %2848 = vmatpush1.bf16.msra.mxu0 %v2759_v35  ;;  %3361 = vmatpush1.bf16.msra.mxu1 %v2759_v35  ;;  %v2764_v24 = vpack.c.bf16 %v2754_v47, %v2752_v28  ;;  %v2756_v50 = vld [vmem:[#allocation3 + $0x68] sm:$0xff]  ;;  %v2758_v9 = vld [vmem:[#allocation3 + $0x78] sm:$0xff]  ;;  %v2763_v58 = vpack.c.bf16 %v2753_v49, %v2751_v43  ;;  %v2755_v7 = vld [vmem:[#allocation3 + $0x60] sm:$0xff]  ;;  %v2808_v28 = vpop.permute.xlu0 %2807 }
 0x92a   : > { %2849 = vmatprep.subr.bf16.mxu0 %v2762_v22  ;;  %3358 = vmatprep.subr.bf16.mxu1 %v2762_v22  ;;  %v2766_v52 = vpack.c.bf16 %v2758_v9, %v2756_v50  ;;  %v2757_v36 = vld [vmem:[#allocation3 + $0x70] sm:$0xff]  ;;  %v5023_v40 = vld [vmem:[#allocation11_spill] sm:$0xff] }
 0x92b   : > { %v2765_v5 = vpack.c.bf16 %v2757_v36, %v2755_v7  ;;  %v5022_v10 = vld [vmem:[#allocation17_spill] sm:$0xff]  ;;  %v5024_v22 = vld [vmem:[#allocation15_spill] sm:$0xff]  ;;  %v5025_v36 = vld [vmem:[#allocation18_spill] sm:$0xff] }
 0x92d   : > { %2850 = vmatpush1.bf16.msra.mxu0 %v2761_v31  ;;  %3362 = vmatpush1.bf16.msra.mxu1 %v2761_v31 }
 0x92e   : > { %2851 = vmatprep.subr.bf16.mxu0 %v2764_v24  ;;  %3359 = vmatprep.subr.bf16.mxu1 %v2764_v24 }
 0x931   : > { %2852 = vmatpush1.bf16.msra.mxu0 %v2763_v58  ;;  %3363 = vmatpush1.bf16.msra.mxu1 %v2763_v58 }
 0x932   : > { %2853 = vmatprep.subr.bf16.mxu0 %v2766_v52  ;;  %3360 = vmatprep.subr.bf16.mxu1 %v2766_v52 }
 0x935   : > { %2854 = vmatpush1.bf16.msra.mxu0 %v2765_v5  ;;  %3364 = vmatpush1.bf16.msra.mxu1 %v2765_v5 }
 0x938   : > { %3160 = vmatmul.mubr.msk.bf16.vlgmr.msra.gmra.mrb[0].mxu0 %vm525_vm0, %v3634_v45  ;;  %3162 = vmatmul.mubr.msk.bf16.vlgmr.msra.gmra.mrb[0].mxu1 %vm525_vm0, %v3635_v46 }
 0x939   : > { %2889 = vmatprep.mubr.bf16.mxu0 %v5016_v1  ;;  %2909 = vmatprep.mubr.bf16.mxu1 %v5016_v1  ;;  %v5021_v1 = vld [vmem:[#allocation13_spill] sm:$0xff] }
 0x940   : > { %3161 = vmatmul.mubr.msk.bf16.gmra.mrb[4].mxu0 %vm525_vm0, %v3636_v61  ;;  %3163 = vmatmul.mubr.msk.bf16.gmra.mrb[4].mxu1 %vm525_vm0, %v3637_v56 }
 0xa0b   : > { %v2881_v54 = vpop.f32.mrb[0].mxu0  ;;  %v2901_v19 = vpop.f32.mrb[0].mxu1 }
 0xa0c   : > { %v2882_v30 = vadd.f32 %v2881_v54, %v2778_v42  ;;  %v2902_v0 = vadd.f32 %v2901_v19, %v2798_v3  ;;  %v2883_v62 = vpop.f32.mrb[1].mxu0  ;;  %v2903_v18 = vpop.f32.mrb[1].mxu1  ;;  %v5032_v54 = vld [vmem:[#allocation21_spill] sm:$0xff] }
 0xa0d   : > { %v2884_v34 = vadd.f32 %v2883_v62, %v2778_v42  ;;  %v2904_v27 = vadd.f32 %v2903_v18, %v2798_v3  ;;  %v2885_v38 = vpop.f32.mrb[2].mxu0  ;;  %v2905_v29 = vpop.f32.mrb[2].mxu1 }
 0xa0e   : > { %v2920_v14 = vadd.f32 %v2882_v30, %v5017_v16  ;;  %v2928_v2 = vadd.f32 %v2902_v0, %v5018_v8  ;;  %v2886_v20 = vadd.f32 %v2885_v38, %v2783_v33  ;;  %v2906_v21 = vadd.f32 %v2905_v29, %v2803_v51  ;;  %v2887_v37 = vpop.f32.mrb[3].mxu0  ;;  %v2907_v15 = vpop.f32.mrb[3].mxu1 }
 0xa0f   : > { %v2921_v23 = vadd.f32 %v2884_v34, %v5019_v59  ;;  %v2929_v25 = vadd.f32 %v2904_v27, %v5020_v4  ;;  %v2888_v53 = vadd.f32 %v2887_v37, %v2783_v33  ;;  %v2908_v6 = vadd.f32 %v2907_v15, %v2803_v51  ;;  %v5030_v33 = vld [vmem:[#allocation22_spill] sm:$0xff] }
 0xa10   : > { %2936 = vst [vmem:[%s4162_s14] sm:$0xff] %v2920_v14  ;;  %2944 = vst [vmem:[%s4162_s14 + $0x40] sm:$0xff] %v2928_v2  ;;  %v2922_v32 = vadd.f32 %v2886_v20, %v5021_v1  ;;  %v2930_v26 = vadd.f32 %v2906_v21, %v5022_v10 }
 0xa11   : > { %2937 = vst [vmem:[%s4162_s14 + $0x8] sm:$0xff] %v2921_v23  ;;  %2945 = vst [vmem:[%s4162_s14 + $0x48] sm:$0xff] %v2929_v25  ;;  %v2923_v35 = vadd.f32 %v2888_v53, %v5023_v40  ;;  %v2931_v17 = vadd.f32 %v2908_v6, %v5024_v22 }
 0xa12   : > { %2938 = vst [vmem:[%s4162_s14 + $0x10] sm:$0xff] %v2922_v32  ;;  %2946 = vst [vmem:[%s4162_s14 + $0x50] sm:$0xff] %v2930_v26 }
 0xa13   : > { %2939 = vst [vmem:[%s4162_s14 + $0x18] sm:$0xff] %v2923_v35  ;;  %2947 = vst [vmem:[%s4162_s14 + $0x58] sm:$0xff] %v2931_v17  ;;  %v2891_v47 = vpop.f32.mrb[4].mxu0  ;;  %v2911_v31 = vpop.f32.mrb[4].mxu1 }
 0xa14   : > { %v2892_v43 = vadd.f32 %v2891_v47, %v2788_v11  ;;  %v2912_v49 = vadd.f32 %v2911_v31, %v2808_v28  ;;  %v2893_v24 = vpop.f32.mrb[5].mxu0  ;;  %v2913_v50 = vpop.f32.mrb[5].mxu1 }
 0xa15   : > { %v2894_v9 = vadd.f32 %v2893_v24, %v2788_v11  ;;  %v2914_v58 = vadd.f32 %v2913_v50, %v2808_v28  ;;  %v2895_v7 = vpop.f32.mrb[6].mxu0  ;;  %v2915_v52 = vpop.f32.mrb[6].mxu1  ;;  %v5029_v11 = vld [vmem:[#allocation10_spill] sm:$0xff] }
 0xa16   : > { %v2924_v13 = vadd.f32 %v2892_v43, %v5025_v36  ;;  %v2932_v60 = vadd.f32 %v2912_v49, %v5026_v39  ;;  %v2896_v44 = vadd.f32 %v2895_v7, %v2793_v63  ;;  %v2916_v5 = vadd.f32 %v2915_v52, %v2813_v41  ;;  %v2897_v45 = vpop.f32.mrb[7].mxu0  ;;  %v2917_v46 = vpop.f32.mrb[7].mxu1 }
 0xa17   : > { %v2925_v55 = vadd.f32 %v2894_v9, %v5027_v12  ;;  %v2933_v48 = vadd.f32 %v2914_v58, %v5028_v57  ;;  %v2898_v61 = vadd.f32 %v2897_v45, %v2793_v63  ;;  %v2918_v56 = vadd.f32 %v2917_v46, %v2813_v41  ;;  %v5031_v63 = vld [vmem:[#allocation8_spill] sm:$0xff] }
 0xa18   : > { %2940 = vst [vmem:[%s4162_s14 + $0x20] sm:$0xff] %v2924_v13  ;;  %2948 = vst [vmem:[%s4162_s14 + $0x60] sm:$0xff] %v2932_v60  ;;  %v2926_v42 = vadd.f32 %v2896_v44, %v5029_v11  ;;  %v2934_v51 = vadd.f32 %v2916_v5, %v5030_v33 }
 0xa19   : > { %2941 = vst [vmem:[%s4162_s14 + $0x28] sm:$0xff] %v2925_v55  ;;  %2949 = vst [vmem:[%s4162_s14 + $0x68] sm:$0xff] %v2933_v48  ;;  %v2927_v3 = vadd.f32 %v2898_v61, %v5031_v63  ;;  %v2935_v19 = vadd.f32 %v2918_v56, %v5032_v54 }
 0xa1a   : > { %2942 = vst [vmem:[%s4162_s14 + $0x30] sm:$0xff] %v2926_v42  ;;  %2950 = vst [vmem:[%s4162_s14 + $0x70] sm:$0xff] %v2934_v51 }
 0xa1b   : > { %2943 = vst [vmem:[%s4162_s14 + $0x38] sm:$0xff] %v2927_v3  ;;  %2951 = vst [vmem:[%s4162_s14 + $0x78] sm:$0xff] %v2935_v19 }
 0xa1c   : > { %3651 = shalt.err (!%p3648_p4)
}
 0xa1d   : > { %s3652_s21 = scalar_lea.hbm %s4837_s23, 2048  ;;  %s3656_s28 = scalar_lea.hbm %s4901_s9, 4096 }
 0xa1e   : > { %p3653_p7 = scmp.ne.s32.totalorder %s4837_s23, %s3652_s21  ;;  %p3657_p10 = scmp.lt.u32.totalorder %s4837_s23, %s4901_s9 }
 0xa1f   : > { %p3658_p11 = scmp.lt.u32.totalorder %s3656_s28, %s3652_s21  ;;  %p3660_p13 = scmp.lt.u32.totalorder %s3652_s21, %s4837_s23 }
 0xa20   : > { %p3654_p8 = pnand %p3653_p7, %p3804_p5 }
 0xa21   : > { %p3659_p12 = por %p3658_p11, %p3657_p10 }
 0xa22   : > { %p3655_p9 = pneg %p3654_p8 }
 0xa23   : > { %p3661_p0 = por %p3660_p13, %p3659_p12 }
 0xa25   : > { %p3662_p1 = pnand %p3661_p0, %p3655_p9 }
 0xa27   : > { %3665 = shalt.err (!%p3662_p1)
}
 0xa28   : > { %s3714_s17 = smov 256   ;;  %s3715_s16 = smov 16  }
 0xa29   : > { %3365 = dma.vmem_to_hbm [thread:$0]  (%p3804_p5), %s4839_s29, 2048, %s4837_s23, %s4851_s24, %s3714_s17, %s3714_s17, %s3715_s16  }
 0xa2a PF: > { %p3371_p2 = scmp.ge.s32.totalorder %s3704_s12, 2  ;;  %s2981_s25 = sand.u32 1, %s3692_s30  }
 0xa2b   : > { %s2982_s26 = scalar_lea.sflag [#allocation5], %s2981_s25 }
 0xa2c   : > { %p3368_p3 = pnand %p3371_p2, %p3808_p6 }
 0xa2e   : > { %3687 = dma.done.wait (!%p3368_p3), %s2982_s26, 2048  }
 0xa2f   : > { %3689 = vsyncadd (!%p3368_p3), %s2982_s26, 4294965248  ;;  %p19_p4 = scmp.ge.s32.totalorder %s3791_s15, 4   ;;  %s5033_s30 = smov %s3696_s10 }
 0xa30   : > { %s5034_s10 = smov %s3700_s11  ;;  %s5035_s11 = smov %s3802_s18 }
 0xa31   : > { %s5036_s12 = smov %s3791_s15  ;;  %21 = sbr.rel (!%p19_p4) target bundleno = 3 (0x3), region = 113 }
 0xa38   :  { %2987 = vsyncpa [#allocation5], 1 }
 0xa39   :  { %2989 = vsyncpa [#allocation5 + $0x1], 1 }

</bundles_post_ra>
